<compile_context>
chip_gen: v6e
topology: v6e:2x2x1
jax: 0.10.0
libtpu: 0.0.40
codegen_flags: <defaults>
</compile_context>

<pallas_src>
import functools

import jax
import jax.numpy as jnp
from jax import lax
from jax.experimental import pallas as pl
from jax.experimental.pallas import tpu as pltpu


def _round_up(x, m):
    return (x + m - 1) // m * m


def _vmem_limit_bytes():
    """Scoped-VMEM limit: safe on v7x (64 MiB/core), raised on v5e/v6e (128 MiB)."""
    limit = 48 * 1024 * 1024
    try:
        cap = int(getattr(pltpu.get_tpu_info(), "vmem_capacity_bytes", 0))
        if cap >= 96 * 1024 * 1024:
            limit = 100 * 1024 * 1024
    except Exception:
        pass
    return limit


def _default_batch_splits(num_dirs):
    """v7x has 2 TensorCores/chip: map the two directions onto both cores via a
    leading "parallel" grid axis.  On 1-TC chips (v5e/v6e) keep the directions
    fused in a single recurrence (splitting would only serialize them)."""
    if num_dirs < 2:
        return 1
    try:
        kind = jax.devices()[0].device_kind.lower()
    except Exception:
        kind = ""
    return num_dirs if "v7" in kind else 1


def _choose_time_chunk(T, rows_blk, dirs_blk, Hp, budget_bytes, requested):
    """Largest time chunk whose pipelined window fits the VMEM budget."""
    if requested is not None:
        return max(1, min(int(requested), T))
    # Per-timestep footprint in the pipelined window: gi (bf16) + out (bf16),
    # both double-buffered by the BlockSpec pipeline.
    per_step = 2 * (rows_blk * 3 * Hp * 2 + rows_blk * Hp * 2)
    # Loop-invariant residents: W_hh (double-buffered), n-gate bias, f32 h scratch.
    fixed = 2 * (dirs_blk * Hp * 3 * Hp * 2 + rows_blk * Hp * 4) + rows_blk * Hp * 4
    avail = max(budget_bytes - fixed, per_step)
    return int(max(1, min(T, avail // per_step)))


def _choose_unroll(tT, rows_blk, Hp):
    """Per-step live f32 vregs scale with rows*3*Hp; keep the unrolled window
    inside the 64-vreg file so spills stay off the serial critical path."""
    step_vregs = 2 * max(1, (rows_blk // 8) * (3 * Hp // 128))
    if step_vregs <= 8:
        u = 8
    elif step_vregs <= 16:
        u = 4
    elif step_vregs <= 32:
        u = 2
    else:
        u = 1
    return max(1, min(u, tT))


# ----------------------------------------------------------------------------
# Pallas kernel: GRU recurrence over one time chunk (all directions fused).
#   gi_ref : (tT, rows, 3*Hp) bf16  precomputed x@W_ih^T + (b_ih + b_hh[r,z]);
#            rows stacks directions along the batch, reverse half pre-flipped
#            in time so every row advances in storage order.
#   whh_ref: (dirs, Hp, 3*Hp) bf16  per-direction W_hh^T, 128-aligned gates.
#   bn_ref : (rows, Hp)       f32   per-row b_hh of the n gate.
#   out_ref: (tT, rows, Hp)   bf16  hidden state at every step.
#   h_scr  : (rows, Hp)       f32   carried hidden state, resident in VMEM.
# ----------------------------------------------------------------------------
def _gru_rec_kernel(gi_ref, whh_ref, bn_ref, out_ref, h_scr, *,
                    tT, rows_per_dir, dirs_in_block, unroll):
    @pl.when(pl.program_id(1) == 0)
    def _():
        h_scr[...] = jnp.zeros_like(h_scr)

    Hp = h_scr.shape[-1]
    bn = bn_ref[...]                                    # (rows, Hp) f32, invariant

    def step(s, h):
        gi_all = gi_ref[s].astype(jnp.float32)          # (rows, 3*Hp)
        parts = []
        for d in range(dirs_in_block):                  # static python loop (1 or 2)
            sl = slice(d * rows_per_dir, (d + 1) * rows_per_dir)
            hd = h[sl]
            gi = gi_all[sl]
            gh = jnp.dot(hd.astype(jnp.bfloat16), whh_ref[d],
                         preferred_element_type=jnp.float32)
            r = jax.nn.sigmoid(gi[:, :Hp] + gh[:, :Hp])
            z = jax.nn.sigmoid(gi[:, Hp:2 * Hp] + gh[:, Hp:2 * Hp])
            n = jnp.tanh(gi[:, 2 * Hp:] + r * (gh[:, 2 * Hp:] + bn[sl]))
            parts.append(n + z * (hd - n))              # == (1-z)*n + z*h
        h_new = parts[0] if dirs_in_block == 1 else jnp.concatenate(parts, axis=0)
        out_ref[s] = h_new.astype(out_ref.dtype)
        return h_new

    h_scr[...] = lax.fori_loop(0, tT, step, h_scr[...], unroll=unroll)


# ----------------------------------------------------------------------------
# One (optionally bidirectional) GRU layer, all directions in one pallas_call.
# x_tm: (T, B, Ein) time-major.  Returns ([out_d (T,B,H)], [h_n_d (B,H)]).
# ----------------------------------------------------------------------------
def gru_layer_fused(x_tm, dir_params, *, time_chunk=None, batch_splits=None):
    T, B, Ein = x_tm.shape
    num_dirs = len(dir_params)
    H, Hp = dir_params[0]["H"], dir_params[0]["Hp"]
    Bp = _round_up(B, 8)                 # full sublanes
    R = num_dirs * Bp                    # stacked rows (fwd then rev)
    f32 = jnp.float32

    n_splits = batch_splits if batch_splits is not None else _default_batch_splits(num_dirs)
    if n_splits < 1 or num_dirs % n_splits != 0:
        n_splits = 1
    dirs_blk = num_dirs // n_splits
    rows_blk = R // n_splits

    # ---- Hoisted input projection: one bf16 MXU GEMM per direction ----
    x_bf = x_tm.astype(jnp.bfloat16)
    gi_dirs = []
    for d, p in enumerate(dir_params):
        xd = x_bf[::-1] if d == 1 else x_bf          # reverse dir reads time backwards
        g = jnp.dot(xd.reshape(T * B, Ein), p["wih_bf"],
                    preferred_element_type=jnp.float32)
        g = (g + p["bih"]).reshape(T, B, 3 * Hp)     # bias add in f32
        if Bp > B:
            g = jnp.pad(g, ((0, 0), (0, Bp - B), (0, 0)))
        gi_dirs.append(g)
    gi = jnp.concatenate(gi_dirs, axis=1)            # (T, R, 3*Hp) f32

    # ---- time chunking, VMEM-budgeted ----
    vmem_limit = _vmem_limit_bytes()
    tT = _choose_time_chunk(T, rows_blk, dirs_blk, Hp,
                            int(vmem_limit * 0.75), time_chunk)
    Tp = _round_up(T, tT)
    nchunks = Tp // tT
    if Tp > T:
        gi = jnp.pad(gi, ((0, Tp - T), (0, 0), (0, 0)))
        # Padded timesteps are exact identities on h: z-gate pre-activation +100.
        gi = gi.at[T:, :, Hp:2 * Hp].set(100.0)
    gi = gi.astype(jnp.bfloat16)

    whh = jnp.stack([p["whh_bf"] for p in dir_params], axis=0)      # (dirs, Hp, 3Hp) bf16
    bn_rows = jnp.concatenate(
        [jnp.broadcast_to(p["bhh_n"][None, :], (Bp, Hp)) for p in dir_params],
        axis=0)                                                     # (R, Hp) f32

    kernel = functools.partial(
        _gru_rec_kernel, tT=tT, rows_per_dir=Bp, dirs_in_block=dirs_blk,
        unroll=_choose_unroll(tT, rows_blk, Hp))

    out = pl.pallas_call(
        kernel,
        out_shape=jax.ShapeDtypeStruct((Tp, R, Hp), jnp.bfloat16),
        grid_spec=pltpu.PrefetchScalarGridSpec(
            num_scalar_prefetch=0,
            grid=(n_splits, nchunks),                # (parallel row-split, time chunks)
            in_specs=[
                pl.BlockSpec((tT, rows_blk, 3 * Hp), lambda sp, c: (c, sp, 0)),
                pl.BlockSpec((dirs_blk, Hp, 3 * Hp), lambda sp, c: (sp, 0, 0)),
                pl.BlockSpec((rows_blk, Hp), lambda sp, c: (sp, 0)),
            ],
            out_specs=pl.BlockSpec((tT, rows_blk, Hp), lambda sp, c: (c, sp, 0)),
            scratch_shapes=[pltpu.VMEM((rows_blk, Hp), f32)],
        ),
        compiler_params=pltpu.CompilerParams(
            dimension_semantics=("parallel", "arbitrary"),
            vmem_limit_bytes=vmem_limit),
    )(gi, whh, bn_rows)

    # ---- unpack per-direction outputs / final hiddens ----
    outs, h_ns = [], []
    for d in range(num_dirs):
        od = out[:T, d * Bp:d * Bp + B, :H].astype(f32)   # (T, B, H)
        h_ns.append(od[T - 1])            # fwd: t = T-1; rev (flipped storage): t = 0
        outs.append(od if d == 0 else od[::-1])           # un-flip the reverse direction
    return outs, h_ns


# ----------------------------------------------------------------------------
# Parameter prep: padded / transposed / bf16 layouts, built once.
# ----------------------------------------------------------------------------
def prepare_gru_dir_params(w_ih, w_hh, b_ih, b_hh):
    """Gate g in (r,z,n) occupies lanes [g*Hp, g*Hp+H).  b_hh for r/z is folded
    into the hoisted bias; b_hh for n stays separate (it sits inside the r*()
    term of the PyTorch GRU)."""
    H = w_hh.shape[1]
    In = w_ih.shape[1]
    Hp = _round_up(H, 128)
    f32 = jnp.float32
    wih_t = jnp.zeros((In, 3 * Hp), f32)
    whh_t = jnp.zeros((Hp, 3 * Hp), f32)
    bih = jnp.zeros((3 * Hp,), f32)
    bhh_n = jnp.zeros((Hp,), f32)
    for g in range(3):
        wih_t = wih_t.at[:, g * Hp:g * Hp + H].set(w_ih[g * H:(g + 1) * H, :].T)
        whh_t = whh_t.at[:H, g * Hp:g * Hp + H].set(w_hh[g * H:(g + 1) * H, :].T)
        bg = b_ih[g * H:(g + 1) * H]
        if g < 2:
            bg = bg + b_hh[g * H:(g + 1) * H]
        bih = bih.at[g * Hp:g * Hp + H].set(bg)
    bhh_n = bhh_n.at[:H].set(b_hh[2 * H:3 * H])
    return {"wih_bf": wih_t.astype(jnp.bfloat16), "bih": bih,
            "whh_bf": whh_t.astype(jnp.bfloat16), "bhh_n": bhh_n,
            "H": H, "Hp": Hp}


def prepare_gru_stack_params(raw_layers):
    return [[prepare_gru_dir_params(*dir_p) for dir_p in layer] for layer in raw_layers]


# ----------------------------------------------------------------------------
# Multi-layer, optionally bidirectional GRU stack (batch_first semantics).
# ----------------------------------------------------------------------------
def gru_stack_pallas(x_bf, prep_layers, use_birnn, **kw):
    """x_bf: (B, T, E) -> enc_outs (B, T, H*dirs) f32, hidden (L*dirs, B, H) f32."""
    dirs = 2 if use_birnn else 1
    inp = jnp.transpose(x_bf, (1, 0, 2))          # (T, B, E) time-major
    hiddens = []
    for layer in prep_layers:
        outs, h_ns = gru_layer_fused(inp, layer, **kw)
        hiddens.extend(h_ns)
        inp = jnp.concatenate(outs, axis=-1) if dirs == 2 else outs[0]
    enc_outs = jnp.transpose(inp, (1, 0, 2)).astype(jnp.float32)
    hidden = jnp.stack(hiddens, axis=0).astype(jnp.float32)
    return enc_outs, hidden


# ----------------------------------------------------------------------------
# Pure-JAX reference (lax.scan, all f32) for correctness checking.
# ----------------------------------------------------------------------------
def gru_layer_ref(x_tm, w_ih, w_hh, b_ih, b_hh, *, reverse=False):
    H = w_hh.shape[1]
    xs = x_tm[::-1] if reverse else x_tm

    def step(h, x):
        gi = x @ w_ih.T + b_ih
        gh = h @ w_hh.T + b_hh
        i_r, i_z, i_n = jnp.split(gi, 3, axis=-1)
        h_r, h_z, h_n = jnp.split(gh, 3, axis=-1)
        r = jax.nn.sigmoid(i_r + h_r)
        z = jax.nn.sigmoid(i_z + h_z)
        n = jnp.tanh(i_n + r * h_n)
        h_new = (1.0 - z) * n + z * h
        return h_new, h_new

    h0 = jnp.zeros((x_tm.shape[1], H), jnp.float32)
    h_last, outs = lax.scan(step, h0, xs)
    if reverse:
        outs = outs[::-1]
    return outs, h_last


def gru_stack_ref(x_bf, raw_layers, use_birnn):
    dirs = 2 if use_birnn else 1
    inp = jnp.transpose(x_bf, (1, 0, 2))
    hiddens = []
    for layer in raw_layers:
        dir_outs = []
        for d in range(dirs):
            w_ih, w_hh, b_ih, b_hh = layer[d]
            o, h_n = gru_layer_ref(inp, w_ih, w_hh, b_ih, b_hh, reverse=(d == 1))
            dir_outs.append(o)
            hiddens.append(h_n)
        inp = jnp.concatenate(dir_outs, axis=-1) if dirs == 2 else dir_outs[0]
    return jnp.transpose(inp, (1, 0, 2)), jnp.stack(hiddens, axis=0)


# ----------------------------------------------------------------------------
# EncRNN parameters + forward (matches the PyTorch module __init__/forward).
# ----------------------------------------------------------------------------
def init_gru_stack_params(key, input_dim, hidden_dim, n_layers, use_birnn):
    dirs = 2 if use_birnn else 1
    bound = hidden_dim ** -0.5
    layers = []
    for l in range(n_layers):
        in_dim = input_dim if l == 0 else hidden_dim * dirs
        per_dir = []
        for _ in range(dirs):
            key, k1, k2, k3, k4 = jax.random.split(key, 5)
            w_ih = jax.random.uniform(k1, (3 * hidden_dim, in_dim),
                                      minval=-bound, maxval=bound, dtype=jnp.float32)
            w_hh = jax.random.uniform(k2, (3 * hidden_dim, hidden_dim),
                                      minval=-bound, maxval=bound, dtype=jnp.float32)
            b_ih = jax.random.uniform(k3, (3 * hidden_dim,),
                                      minval=-bound, maxval=bound, dtype=jnp.float32)
            b_hh = jax.random.uniform(k4, (3 * hidden_dim,),
                                      minval=-bound, maxval=bound, dtype=jnp.float32)
            per_dir.append((w_ih, w_hh, b_ih, b_hh))
        layers.append(per_dir)
    return layers


def init_enc_rnn_params(key, vocab_size, embed_dim, hidden_dim, n_layers, use_birnn):
    k_emb, k_rnn, k_gru = jax.random.split(key, 3)
    raw = {
        "embed": jax.random.normal(k_emb, (vocab_size, embed_dim), dtype=jnp.float32),
        "rnn": init_gru_stack_params(k_rnn, embed_dim, hidden_dim, n_layers, use_birnn),
        "gru": init_gru_stack_params(k_gru, hidden_dim, hidden_dim, n_layers, use_birnn),
    }
    prepared = {
        "embed": raw["embed"],
        "rnn": prepare_gru_stack_params(raw["rnn"]),
        "gru": prepare_gru_stack_params(raw["gru"]),
    }
    return raw, prepared


def enc_rnn_forward(prep_params, inputs, use_birnn, inp_type="input", **kw):
    """Pallas forward.  inputs: (B, T) int tokens when inp_type == 'input',
    else (B, T, hidden_dim) float features (PyTorch `type` argument)."""
    if inp_type == "input":
        # TODO(synk): nn.Dropout is inference-mode identity only.
        embs = jnp.take(prep_params["embed"], inputs, axis=0)   # (B, T, E)
        return gru_stack_pallas(embs, prep_params["rnn"], use_birnn, **kw)
    return gru_stack_pallas(inputs, prep_params["gru"], use_birnn, **kw)


def enc_rnn_forward_ref(raw_params, inputs, use_birnn, inp_type="input"):
    if inp_type == "input":
        embs = jnp.take(raw_params["embed"], inputs, axis=0)
        return gru_stack_ref(embs, raw_params["rnn"], use_birnn)
    return gru_stack_ref(inputs, raw_params["gru"], use_birnn)


# ----------------------------------------------------------------------------
if __name__ == "__main__":
    vocab_size, embed_dim, hidden_dim = 32, 16, 32
    n_layers, B, T = 2, 2, 8
    base_key = jax.random.PRNGKey(0)

    for use_birnn in (False, True):
        k_params, k_tok, k_feat = jax.random.split(
            jax.random.fold_in(base_key, int(use_birnn)), 3)
        raw, prep = init_enc_rnn_params(k_params, vocab_size, embed_dim,
                                        hidden_dim, n_layers, use_birnn)
        tokens = jax.random.randint(k_tok, (B, T), 0, vocab_size, dtype=jnp.int32)
        feats = jax.random.normal(k_feat, (B, T, hidden_dim), dtype=jnp.float32)
        dirs = 2 if use_birnn else 1

        for inp_type, inp in (("input", tokens), ("state", feats)):
            enc_outs, hidden = enc_rnn_forward(prep, inp, use_birnn, inp_type)
            jax.block_until_ready((enc_outs, hidden))

            # Cross-check against the pure-JAX all-f32 reference.  The kernel
            # feeds bf16 operands to the MXU and stores a bf16 output slab,
            # hence the loose tolerance.
            ref_outs, ref_hidden = enc_rnn_forward_ref(raw, inp, use_birnn, inp_type)
            assert enc_outs.shape == (B, T, hidden_dim * dirs)
            assert hidden.shape == (n_layers * dirs, B, hidden_dim)
            assert jnp.allclose(enc_outs, ref_outs, rtol=5e-2, atol=5e-2), inp_type
            assert jnp.allclose(hidden, ref_hidden, rtol=5e-2, atol=5e-2), inp_type

    print("KERNEL_OK")
</pallas_src>

<mosaic_0001>
module attributes {stable_mosaic.version = 11 : i64} {
  func.func @_gru_rec_kernel(%arg0: i32, %arg1: i32, %arg2: memref<8x8x384xbf16, #tpu.memory_space<vmem>>, %arg3: memref<1x128x384xbf16, #tpu.memory_space<vmem>>, %arg4: memref<8x128xf32, #tpu.memory_space<vmem>>, %arg5: memref<8x8x128xbf16, #tpu.memory_space<vmem>>, %arg6: memref<8x128xf32, #tpu.memory_space<vmem>>) attributes {dimension_semantics = [#tpu.dimension_semantics<parallel>, #tpu.dimension_semantics<arbitrary>], iteration_bounds = array<i64: 1, 1>, scalar_prefetch = 0 : i64, scratch_operands = 1 : i64, tpu.core_type = #tpu.core_type<tc>, window_params = [{transform_indices = @transform_0, window_bounds = array<i64: 8, 8, 384>}, {transform_indices = @transform_1, window_bounds = array<i64: 1, 128, 384>}, {transform_indices = @transform_2, window_bounds = array<i64: 8, 128>}, {transform_indices = @transform_3, window_bounds = array<i64: 8, 8, 128>}]} {
    %c0_i32 = arith.constant 0 : i32
    %0 = arith.cmpi eq, %arg1, %c0_i32 : i32
    %1 = arith.extui %0 : i1 to i32
    %c0_i32_0 = arith.constant 0 : i32
    %2 = arith.cmpi ne, %1, %c0_i32_0 : i32
    scf.if %2 {
      %cst_86 = arith.constant 0.000000e+00 : f32
      %310 = vector.broadcast %cst_86 : f32 to vector<8x128xf32>
      %c0_87 = arith.constant 0 : index
      %c0_88 = arith.constant 0 : index
      %311 = vector.load %arg6[%c0_87, %c0_88] : memref<8x128xf32, #tpu.memory_space<vmem>>, vector<8x128xf32>
      tpu.vector_store %arg6[%c0_87, %c0_88], %310 {strides = array<i32>} : memref<8x128xf32, #tpu.memory_space<vmem>>, vector<8x128xf32>,
    } else {
    }
    %c0 = arith.constant 0 : index
    %c0_1 = arith.constant 0 : index
    %3 = vector.load %arg4[%c0, %c0_1] : memref<8x128xf32, #tpu.memory_space<vmem>>, vector<8x128xf32>
    %c0_2 = arith.constant 0 : index
    %c0_3 = arith.constant 0 : index
    %4 = vector.load %arg6[%c0_2, %c0_3] : memref<8x128xf32, #tpu.memory_space<vmem>>, vector<8x128xf32>
    %c0_i32_4 = arith.constant 0 : i32
    %5 = arith.index_cast %c0_i32_4 : i32 to index
    %c0_5 = arith.constant 0 : index
    %c0_6 = arith.constant 0 : index
    %6 = vector.load %arg2[%5, %c0_5, %c0_6] : memref<8x8x384xbf16, #tpu.memory_space<vmem>>, vector<1x8x384xbf16>
    %7 = vector.shape_cast %6 : vector<1x8x384xbf16> to vector<8x384xbf16>
    %8 = arith.extf %7 : vector<8x384xbf16> to vector<8x384xf32>
    %9 = arith.truncf %4 : vector<8x128xf32> to vector<8x128xbf16>
    %c0_7 = arith.constant 0 : index
    %c0_8 = arith.constant 0 : index
    %c0_9 = arith.constant 0 : index
    %10 = vector.load %arg3[%c0_7, %c0_8, %c0_9] : memref<1x128x384xbf16, #tpu.memory_space<vmem>>, vector<1x128x384xbf16>
    %11 = vector.shape_cast %10 : vector<1x128x384xbf16> to vector<128x384xbf16>
    %cst = arith.constant dense<0.000000e+00> : vector<8x384xf32>
    %12 = tpu.matmul %9, %11, %cst {dimension_numbers = #tpu.dot_dimension_numbers<[1], [0], [0], [1], [0, 0, 1, 1], [], []>} : vector<8x128xbf16>, vector<128x384xbf16>, vector<8x384xf32> -> vector<8x384xf32>
    %13 = vector.extract_strided_slice %8 {offsets = [0, 0], sizes = [8, 128], strides = [1, 1]} : vector<8x384xf32> to vector<8x128xf32>
    %14 = vector.extract_strided_slice %12 {offsets = [0, 0], sizes = [8, 128], strides = [1, 1]} : vector<8x384xf32> to vector<8x128xf32>
    %15 = arith.addf %13, %14 : vector<8x128xf32>
    %16 = arith.negf %15 : vector<8x128xf32>
    %17 = math.exp %16 : vector<8x128xf32>
    %cst_10 = arith.constant 1.000000e+00 : f32
    %18 = vector.broadcast %cst_10 : f32 to vector<8x128xf32>
    %19 = arith.addf %18, %17 : vector<8x128xf32>
    %20 = arith.divf %18, %19 : vector<8x128xf32>
    %21 = vector.extract_strided_slice %8 {offsets = [0, 128], sizes = [8, 128], strides = [1, 1]} : vector<8x384xf32> to vector<8x128xf32>
    %22 = vector.extract_strided_slice %12 {offsets = [0, 128], sizes = [8, 128], strides = [1, 1]} : vector<8x384xf32> to vector<8x128xf32>
    %23 = arith.addf %21, %22 : vector<8x128xf32>
    %24 = arith.negf %23 : vector<8x128xf32>
    %25 = math.exp %24 : vector<8x128xf32>
    %cst_11 = arith.constant 1.000000e+00 : f32
    %26 = vector.broadcast %cst_11 : f32 to vector<8x128xf32>
    %27 = arith.addf %26, %25 : vector<8x128xf32>
    %28 = arith.divf %26, %27 : vector<8x128xf32>
    %29 = vector.extract_strided_slice %8 {offsets = [0, 256], sizes = [8, 128], strides = [1, 1]} : vector<8x384xf32> to vector<8x128xf32>
    %30 = vector.extract_strided_slice %12 {offsets = [0, 256], sizes = [8, 128], strides = [1, 1]} : vector<8x384xf32> to vector<8x128xf32>
    %31 = arith.addf %30, %3 : vector<8x128xf32>
    %32 = arith.mulf %20, %31 : vector<8x128xf32>
    %33 = arith.addf %29, %32 : vector<8x128xf32>
    %34 = math.tanh %33 : vector<8x128xf32>
    %35 = arith.subf %4, %34 : vector<8x128xf32>
    %36 = arith.mulf %28, %35 : vector<8x128xf32>
    %37 = arith.addf %34, %36 : vector<8x128xf32>
    %38 = arith.truncf %37 : vector<8x128xf32> to vector<8x128xbf16>
    %39 = arith.index_cast %c0_i32_4 : i32 to index
    %c0_12 = arith.constant 0 : index
    %c0_13 = arith.constant 0 : index
    %40 = vector.load %arg5[%39, %c0_12, %c0_13] : memref<8x8x128xbf16, #tpu.memory_space<vmem>>, vector<1x8x128xbf16>
    %41 = vector.shape_cast %40 : vector<1x8x128xbf16> to vector<8x128xbf16>
    %42 = vector.shape_cast %38 : vector<8x128xbf16> to vector<1x8x128xbf16>
    tpu.vector_store %arg5[%39, %c0_12, %c0_13], %42 {strides = array<i32>} : memref<8x8x128xbf16, #tpu.memory_space<vmem>>, vector<1x8x128xbf16>,
    %c1_i32 = arith.constant 1 : i32
    %43 = arith.index_cast %c1_i32 : i32 to index
    %c0_14 = arith.constant 0 : index
    %c0_15 = arith.constant 0 : index
    %44 = vector.load %arg2[%43, %c0_14, %c0_15] : memref<8x8x384xbf16, #tpu.memory_space<vmem>>, vector<1x8x384xbf16>
    %45 = vector.shape_cast %44 : vector<1x8x384xbf16> to vector<8x384xbf16>
    %46 = arith.extf %45 : vector<8x384xbf16> to vector<8x384xf32>
    %47 = arith.truncf %37 : vector<8x128xf32> to vector<8x128xbf16>
    %c0_16 = arith.constant 0 : index
    %c0_17 = arith.constant 0 : index
    %c0_18 = arith.constant 0 : index
    %48 = vector.load %arg3[%c0_16, %c0_17, %c0_18] : memref<1x128x384xbf16, #tpu.memory_space<vmem>>, vector<1x128x384xbf16>
    %49 = vector.shape_cast %48 : vector<1x128x384xbf16> to vector<128x384xbf16>
    %cst_19 = arith.constant dense<0.000000e+00> : vector<8x384xf32>
    %50 = tpu.matmul %47, %49, %cst_19 {dimension_numbers = #tpu.dot_dimension_numbers<[1], [0], [0], [1], [0, 0, 1, 1], [], []>} : vector<8x128xbf16>, vector<128x384xbf16>, vector<8x384xf32> -> vector<8x384xf32>
    %51 = vector.extract_strided_slice %46 {offsets = [0, 0], sizes = [8, 128], strides = [1, 1]} : vector<8x384xf32> to vector<8x128xf32>
    %52 = vector.extract_strided_slice %50 {offsets = [0, 0], sizes = [8, 128], strides = [1, 1]} : vector<8x384xf32> to vector<8x128xf32>
    %53 = arith.addf %51, %52 : vector<8x128xf32>
    %54 = arith.negf %53 : vector<8x128xf32>
    %55 = math.exp %54 : vector<8x128xf32>
    %cst_20 = arith.constant 1.000000e+00 : f32
    %56 = vector.broadcast %cst_20 : f32 to vector<8x128xf32>
    %57 = arith.addf %56, %55 : vector<8x128xf32>
    %58 = arith.divf %56, %57 : vector<8x128xf32>
    %59 = vector.extract_strided_slice %46 {offsets = [0, 128], sizes = [8, 128], strides = [1, 1]} : vector<8x384xf32> to vector<8x128xf32>
    %60 = vector.extract_strided_slice %50 {offsets = [0, 128], sizes = [8, 128], strides = [1, 1]} : vector<8x384xf32> to vector<8x128xf32>
    %61 = arith.addf %59, %60 : vector<8x128xf32>
    %62 = arith.negf %61 : vector<8x128xf32>
    %63 = math.exp %62 : vector<8x128xf32>
    %cst_21 = arith.constant 1.000000e+00 : f32
    %64 = vector.broadcast %cst_21 : f32 to vector<8x128xf32>
    %65 = arith.addf %64, %63 : vector<8x128xf32>
    %66 = arith.divf %64, %65 : vector<8x128xf32>
    %67 = vector.extract_strided_slice %46 {offsets = [0, 256], sizes = [8, 128], strides = [1, 1]} : vector<8x384xf32> to vector<8x128xf32>
    %68 = vector.extract_strided_slice %50 {offsets = [0, 256], sizes = [8, 128], strides = [1, 1]} : vector<8x384xf32> to vector<8x128xf32>
    %69 = arith.addf %68, %3 : vector<8x128xf32>
    %70 = arith.mulf %58, %69 : vector<8x128xf32>
    %71 = arith.addf %67, %70 : vector<8x128xf32>
    %72 = math.tanh %71 : vector<8x128xf32>
    %73 = arith.subf %37, %72 : vector<8x128xf32>
    %74 = arith.mulf %66, %73 : vector<8x128xf32>
    %75 = arith.addf %72, %74 : vector<8x128xf32>
    %76 = arith.truncf %75 : vector<8x128xf32> to vector<8x128xbf16>
    %77 = arith.index_cast %c1_i32 : i32 to index
    %c0_22 = arith.constant 0 : index
    %c0_23 = arith.constant 0 : index
    %78 = vector.load %arg5[%77, %c0_22, %c0_23] : memref<8x8x128xbf16, #tpu.memory_space<vmem>>, vector<1x8x128xbf16>
    %79 = vector.shape_cast %78 : vector<1x8x128xbf16> to vector<8x128xbf16>
    %80 = vector.shape_cast %76 : vector<8x128xbf16> to vector<1x8x128xbf16>
    tpu.vector_store %arg5[%77, %c0_22, %c0_23], %80 {strides = array<i32>} : memref<8x8x128xbf16, #tpu.memory_space<vmem>>, vector<1x8x128xbf16>,
    %c2_i32 = arith.constant 2 : i32
    %81 = arith.index_cast %c2_i32 : i32 to index
    %c0_24 = arith.constant 0 : index
    %c0_25 = arith.constant 0 : index
    %82 = vector.load %arg2[%81, %c0_24, %c0_25] : memref<8x8x384xbf16, #tpu.memory_space<vmem>>, vector<1x8x384xbf16>
    %83 = vector.shape_cast %82 : vector<1x8x384xbf16> to vector<8x384xbf16>
    %84 = arith.extf %83 : vector<8x384xbf16> to vector<8x384xf32>
    %85 = arith.truncf %75 : vector<8x128xf32> to vector<8x128xbf16>
    %c0_26 = arith.constant 0 : index
    %c0_27 = arith.constant 0 : index
    %c0_28 = arith.constant 0 : index
    %86 = vector.load %arg3[%c0_26, %c0_27, %c0_28] : memref<1x128x384xbf16, #tpu.memory_space<vmem>>, vector<1x128x384xbf16>
    %87 = vector.shape_cast %86 : vector<1x128x384xbf16> to vector<128x384xbf16>
    %cst_29 = arith.constant dense<0.000000e+00> : vector<8x384xf32>
    %88 = tpu.matmul %85, %87, %cst_29 {dimension_numbers = #tpu.dot_dimension_numbers<[1], [0], [0], [1], [0, 0, 1, 1], [], []>} : vector<8x128xbf16>, vector<128x384xbf16>, vector<8x384xf32> -> vector<8x384xf32>
    %89 = vector.extract_strided_slice %84 {offsets = [0, 0], sizes = [8, 128], strides = [1, 1]} : vector<8x384xf32> to vector<8x128xf32>
    %90 = vector.extract_strided_slice %88 {offsets = [0, 0], sizes = [8, 128], strides = [1, 1]} : vector<8x384xf32> to vector<8x128xf32>
    %91 = arith.addf %89, %90 : vector<8x128xf32>
    %92 = arith.negf %91 : vector<8x128xf32>
    %93 = math.exp %92 : vector<8x128xf32>
    %cst_30 = arith.constant 1.000000e+00 : f32
    %94 = vector.broadcast %cst_30 : f32 to vector<8x128xf32>
    %95 = arith.addf %94, %93 : vector<8x128xf32>
    %96 = arith.divf %94, %95 : vector<8x128xf32>
    %97 = vector.extract_strided_slice %84 {offsets = [0, 128], sizes = [8, 128], strides = [1, 1]} : vector<8x384xf32> to vector<8x128xf32>
    %98 = vector.extract_strided_slice %88 {offsets = [0, 128], sizes = [8, 128], strides = [1, 1]} : vector<8x384xf32> to vector<8x128xf32>
    %99 = arith.addf %97, %98 : vector<8x128xf32>
    %100 = arith.negf %99 : vector<8x128xf32>
    %101 = math.exp %100 : vector<8x128xf32>
    %cst_31 = arith.constant 1.000000e+00 : f32
    %102 = vector.broadcast %cst_31 : f32 to vector<8x128xf32>
    %103 = arith.addf %102, %101 : vector<8x128xf32>
    %104 = arith.divf %102, %103 : vector<8x128xf32>
    %105 = vector.extract_strided_slice %84 {offsets = [0, 256], sizes = [8, 128], strides = [1, 1]} : vector<8x384xf32> to vector<8x128xf32>
    %106 = vector.extract_strided_slice %88 {offsets = [0, 256], sizes = [8, 128], strides = [1, 1]} : vector<8x384xf32> to vector<8x128xf32>
    %107 = arith.addf %106, %3 : vector<8x128xf32>
    %108 = arith.mulf %96, %107 : vector<8x128xf32>
    %109 = arith.addf %105, %108 : vector<8x128xf32>
    %110 = math.tanh %109 : vector<8x128xf32>
    %111 = arith.subf %75, %110 : vector<8x128xf32>
    %112 = arith.mulf %104, %111 : vector<8x128xf32>
    %113 = arith.addf %110, %112 : vector<8x128xf32>
    %114 = arith.truncf %113 : vector<8x128xf32> to vector<8x128xbf16>
    %115 = arith.index_cast %c2_i32 : i32 to index
    %c0_32 = arith.constant 0 : index
    %c0_33 = arith.constant 0 : index
    %116 = vector.load %arg5[%115, %c0_32, %c0_33] : memref<8x8x128xbf16, #tpu.memory_space<vmem>>, vector<1x8x128xbf16>
    %117 = vector.shape_cast %116 : vector<1x8x128xbf16> to vector<8x128xbf16>
    %118 = vector.shape_cast %114 : vector<8x128xbf16> to vector<1x8x128xbf16>
    tpu.vector_store %arg5[%115, %c0_32, %c0_33], %118 {strides = array<i32>} : memref<8x8x128xbf16, #tpu.memory_space<vmem>>, vector<1x8x128xbf16>,
    %c3_i32 = arith.constant 3 : i32
    %119 = arith.index_cast %c3_i32 : i32 to index
    %c0_34 = arith.constant 0 : index
    %c0_35 = arith.constant 0 : index
    %120 = vector.load %arg2[%119, %c0_34, %c0_35] : memref<8x8x384xbf16, #tpu.memory_space<vmem>>, vector<1x8x384xbf16>
    %121 = vector.shape_cast %120 : vector<1x8x384xbf16> to vector<8x384xbf16>
    %122 = arith.extf %121 : vector<8x384xbf16> to vector<8x384xf32>
    %123 = arith.truncf %113 : vector<8x128xf32> to vector<8x128xbf16>
    %c0_36 = arith.constant 0 : index
    %c0_37 = arith.constant 0 : index
    %c0_38 = arith.constant 0 : index
    %124 = vector.load %arg3[%c0_36, %c0_37, %c0_38] : memref<1x128x384xbf16, #tpu.memory_space<vmem>>, vector<1x128x384xbf16>
    %125 = vector.shape_cast %124 : vector<1x128x384xbf16> to vector<128x384xbf16>
    %cst_39 = arith.constant dense<0.000000e+00> : vector<8x384xf32>
    %126 = tpu.matmul %123, %125, %cst_39 {dimension_numbers = #tpu.dot_dimension_numbers<[1], [0], [0], [1], [0, 0, 1, 1], [], []>} : vector<8x128xbf16>, vector<128x384xbf16>, vector<8x384xf32> -> vector<8x384xf32>
    %127 = vector.extract_strided_slice %122 {offsets = [0, 0], sizes = [8, 128], strides = [1, 1]} : vector<8x384xf32> to vector<8x128xf32>
    %128 = vector.extract_strided_slice %126 {offsets = [0, 0], sizes = [8, 128], strides = [1, 1]} : vector<8x384xf32> to vector<8x128xf32>
    %129 = arith.addf %127, %128 : vector<8x128xf32>
    %130 = arith.negf %129 : vector<8x128xf32>
    %131 = math.exp %130 : vector<8x128xf32>
    %cst_40 = arith.constant 1.000000e+00 : f32
    %132 = vector.broadcast %cst_40 : f32 to vector<8x128xf32>
    %133 = arith.addf %132, %131 : vector<8x128xf32>
    %134 = arith.divf %132, %133 : vector<8x128xf32>
    %135 = vector.extract_strided_slice %122 {offsets = [0, 128], sizes = [8, 128], strides = [1, 1]} : vector<8x384xf32> to vector<8x128xf32>
    %136 = vector.extract_strided_slice %126 {offsets = [0, 128], sizes = [8, 128], strides = [1, 1]} : vector<8x384xf32> to vector<8x128xf32>
    %137 = arith.addf %135, %136 : vector<8x128xf32>
    %138 = arith.negf %137 : vector<8x128xf32>
    %139 = math.exp %138 : vector<8x128xf32>
    %cst_41 = arith.constant 1.000000e+00 : f32
    %140 = vector.broadcast %cst_41 : f32 to vector<8x128xf32>
    %141 = arith.addf %140, %139 : vector<8x128xf32>
    %142 = arith.divf %140, %141 : vector<8x128xf32>
    %143 = vector.extract_strided_slice %122 {offsets = [0, 256], sizes = [8, 128], strides = [1, 1]} : vector<8x384xf32> to vector<8x128xf32>
    %144 = vector.extract_strided_slice %126 {offsets = [0, 256], sizes = [8, 128], strides = [1, 1]} : vector<8x384xf32> to vector<8x128xf32>
    %145 = arith.addf %144, %3 : vector<8x128xf32>
    %146 = arith.mulf %134, %145 : vector<8x128xf32>
    %147 = arith.addf %143, %146 : vector<8x128xf32>
    %148 = math.tanh %147 : vector<8x128xf32>
    %149 = arith.subf %113, %148 : vector<8x128xf32>
    %150 = arith.mulf %142, %149 : vector<8x128xf32>
    %151 = arith.addf %148, %150 : vector<8x128xf32>
    %152 = arith.truncf %151 : vector<8x128xf32> to vector<8x128xbf16>
    %153 = arith.index_cast %c3_i32 : i32 to index
    %c0_42 = arith.constant 0 : index
    %c0_43 = arith.constant 0 : index
    %154 = vector.load %arg5[%153, %c0_42, %c0_43] : memref<8x8x128xbf16, #tpu.memory_space<vmem>>, vector<1x8x128xbf16>
    %155 = vector.shape_cast %154 : vector<1x8x128xbf16> to vector<8x128xbf16>
    %156 = vector.shape_cast %152 : vector<8x128xbf16> to vector<1x8x128xbf16>
    tpu.vector_store %arg5[%153, %c0_42, %c0_43], %156 {strides = array<i32>} : memref<8x8x128xbf16, #tpu.memory_space<vmem>>, vector<1x8x128xbf16>,
    %c4_i32 = arith.constant 4 : i32
    %157 = arith.index_cast %c4_i32 : i32 to index
    %c0_44 = arith.constant 0 : index
    %c0_45 = arith.constant 0 : index
    %158 = vector.load %arg2[%157, %c0_44, %c0_45] : memref<8x8x384xbf16, #tpu.memory_space<vmem>>, vector<1x8x384xbf16>
    %159 = vector.shape_cast %158 : vector<1x8x384xbf16> to vector<8x384xbf16>
    %160 = arith.extf %159 : vector<8x384xbf16> to vector<8x384xf32>
    %161 = arith.truncf %151 : vector<8x128xf32> to vector<8x128xbf16>
    %c0_46 = arith.constant 0 : index
    %c0_47 = arith.constant 0 : index
    %c0_48 = arith.constant 0 : index
    %162 = vector.load %arg3[%c0_46, %c0_47, %c0_48] : memref<1x128x384xbf16, #tpu.memory_space<vmem>>, vector<1x128x384xbf16>
    %163 = vector.shape_cast %162 : vector<1x128x384xbf16> to vector<128x384xbf16>
    %cst_49 = arith.constant dense<0.000000e+00> : vector<8x384xf32>
    %164 = tpu.matmul %161, %163, %cst_49 {dimension_numbers = #tpu.dot_dimension_numbers<[1], [0], [0], [1], [0, 0, 1, 1], [], []>} : vector<8x128xbf16>, vector<128x384xbf16>, vector<8x384xf32> -> vector<8x384xf32>
    %165 = vector.extract_strided_slice %160 {offsets = [0, 0], sizes = [8, 128], strides = [1, 1]} : vector<8x384xf32> to vector<8x128xf32>
    %166 = vector.extract_strided_slice %164 {offsets = [0, 0], sizes = [8, 128], strides = [1, 1]} : vector<8x384xf32> to vector<8x128xf32>
    %167 = arith.addf %165, %166 : vector<8x128xf32>
    %168 = arith.negf %167 : vector<8x128xf32>
    %169 = math.exp %168 : vector<8x128xf32>
    %cst_50 = arith.constant 1.000000e+00 : f32
    %170 = vector.broadcast %cst_50 : f32 to vector<8x128xf32>
    %171 = arith.addf %170, %169 : vector<8x128xf32>
    %172 = arith.divf %170, %171 : vector<8x128xf32>
    %173 = vector.extract_strided_slice %160 {offsets = [0, 128], sizes = [8, 128], strides = [1, 1]} : vector<8x384xf32> to vector<8x128xf32>
    %174 = vector.extract_strided_slice %164 {offsets = [0, 128], sizes = [8, 128], strides = [1, 1]} : vector<8x384xf32> to vector<8x128xf32>
    %175 = arith.addf %173, %174 : vector<8x128xf32>
    %176 = arith.negf %175 : vector<8x128xf32>
    %177 = math.exp %176 : vector<8x128xf32>
    %cst_51 = arith.constant 1.000000e+00 : f32
    %178 = vector.broadcast %cst_51 : f32 to vector<8x128xf32>
    %179 = arith.addf %178, %177 : vector<8x128xf32>
    %180 = arith.divf %178, %179 : vector<8x128xf32>
    %181 = vector.extract_strided_slice %160 {offsets = [0, 256], sizes = [8, 128], strides = [1, 1]} : vector<8x384xf32> to vector<8x128xf32>
    %182 = vector.extract_strided_slice %164 {offsets = [0, 256], sizes = [8, 128], strides = [1, 1]} : vector<8x384xf32> to vector<8x128xf32>
    %183 = arith.addf %182, %3 : vector<8x128xf32>
    %184 = arith.mulf %172, %183 : vector<8x128xf32>
    %185 = arith.addf %181, %184 : vector<8x128xf32>
    %186 = math.tanh %185 : vector<8x128xf32>
    %187 = arith.subf %151, %186 : vector<8x128xf32>
    %188 = arith.mulf %180, %187 : vector<8x128xf32>
    %189 = arith.addf %186, %188 : vector<8x128xf32>
    %190 = arith.truncf %189 : vector<8x128xf32> to vector<8x128xbf16>
    %191 = arith.index_cast %c4_i32 : i32 to index
    %c0_52 = arith.constant 0 : index
    %c0_53 = arith.constant 0 : index
    %192 = vector.load %arg5[%191, %c0_52, %c0_53] : memref<8x8x128xbf16, #tpu.memory_space<vmem>>, vector<1x8x128xbf16>
    %193 = vector.shape_cast %192 : vector<1x8x128xbf16> to vector<8x128xbf16>
    %194 = vector.shape_cast %190 : vector<8x128xbf16> to vector<1x8x128xbf16>
    tpu.vector_store %arg5[%191, %c0_52, %c0_53], %194 {strides = array<i32>} : memref<8x8x128xbf16, #tpu.memory_space<vmem>>, vector<1x8x128xbf16>,
    %c5_i32 = arith.constant 5 : i32
    %195 = arith.index_cast %c5_i32 : i32 to index
    %c0_54 = arith.constant 0 : index
    %c0_55 = arith.constant 0 : index
    %196 = vector.load %arg2[%195, %c0_54, %c0_55] : memref<8x8x384xbf16, #tpu.memory_space<vmem>>, vector<1x8x384xbf16>
    %197 = vector.shape_cast %196 : vector<1x8x384xbf16> to vector<8x384xbf16>
    %198 = arith.extf %197 : vector<8x384xbf16> to vector<8x384xf32>
    %199 = arith.truncf %189 : vector<8x128xf32> to vector<8x128xbf16>
    %c0_56 = arith.constant 0 : index
    %c0_57 = arith.constant 0 : index
    %c0_58 = arith.constant 0 : index
    %200 = vector.load %arg3[%c0_56, %c0_57, %c0_58] : memref<1x128x384xbf16, #tpu.memory_space<vmem>>, vector<1x128x384xbf16>
    %201 = vector.shape_cast %200 : vector<1x128x384xbf16> to vector<128x384xbf16>
    %cst_59 = arith.constant dense<0.000000e+00> : vector<8x384xf32>
    %202 = tpu.matmul %199, %201, %cst_59 {dimension_numbers = #tpu.dot_dimension_numbers<[1], [0], [0], [1], [0, 0, 1, 1], [], []>} : vector<8x128xbf16>, vector<128x384xbf16>, vector<8x384xf32> -> vector<8x384xf32>
    %203 = vector.extract_strided_slice %198 {offsets = [0, 0], sizes = [8, 128], strides = [1, 1]} : vector<8x384xf32> to vector<8x128xf32>
    %204 = vector.extract_strided_slice %202 {offsets = [0, 0], sizes = [8, 128], strides = [1, 1]} : vector<8x384xf32> to vector<8x128xf32>
    %205 = arith.addf %203, %204 : vector<8x128xf32>
    %206 = arith.negf %205 : vector<8x128xf32>
    %207 = math.exp %206 : vector<8x128xf32>
    %cst_60 = arith.constant 1.000000e+00 : f32
    %208 = vector.broadcast %cst_60 : f32 to vector<8x128xf32>
    %209 = arith.addf %208, %207 : vector<8x128xf32>
    %210 = arith.divf %208, %209 : vector<8x128xf32>
    %211 = vector.extract_strided_slice %198 {offsets = [0, 128], sizes = [8, 128], strides = [1, 1]} : vector<8x384xf32> to vector<8x128xf32>
    %212 = vector.extract_strided_slice %202 {offsets = [0, 128], sizes = [8, 128], strides = [1, 1]} : vector<8x384xf32> to vector<8x128xf32>
    %213 = arith.addf %211, %212 : vector<8x128xf32>
    %214 = arith.negf %213 : vector<8x128xf32>
    %215 = math.exp %214 : vector<8x128xf32>
    %cst_61 = arith.constant 1.000000e+00 : f32
    %216 = vector.broadcast %cst_61 : f32 to vector<8x128xf32>
    %217 = arith.addf %216, %215 : vector<8x128xf32>
    %218 = arith.divf %216, %217 : vector<8x128xf32>
    %219 = vector.extract_strided_slice %198 {offsets = [0, 256], sizes = [8, 128], strides = [1, 1]} : vector<8x384xf32> to vector<8x128xf32>
    %220 = vector.extract_strided_slice %202 {offsets = [0, 256], sizes = [8, 128], strides = [1, 1]} : vector<8x384xf32> to vector<8x128xf32>
    %221 = arith.addf %220, %3 : vector<8x128xf32>
    %222 = arith.mulf %210, %221 : vector<8x128xf32>
    %223 = arith.addf %219, %222 : vector<8x128xf32>
    %224 = math.tanh %223 : vector<8x128xf32>
    %225 = arith.subf %189, %224 : vector<8x128xf32>
    %226 = arith.mulf %218, %225 : vector<8x128xf32>
    %227 = arith.addf %224, %226 : vector<8x128xf32>
    %228 = arith.truncf %227 : vector<8x128xf32> to vector<8x128xbf16>
    %229 = arith.index_cast %c5_i32 : i32 to index
    %c0_62 = arith.constant 0 : index
    %c0_63 = arith.constant 0 : index
    %230 = vector.load %arg5[%229, %c0_62, %c0_63] : memref<8x8x128xbf16, #tpu.memory_space<vmem>>, vector<1x8x128xbf16>
    %231 = vector.shape_cast %230 : vector<1x8x128xbf16> to vector<8x128xbf16>
    %232 = vector.shape_cast %228 : vector<8x128xbf16> to vector<1x8x128xbf16>
    tpu.vector_store %arg5[%229, %c0_62, %c0_63], %232 {strides = array<i32>} : memref<8x8x128xbf16, #tpu.memory_space<vmem>>, vector<1x8x128xbf16>,
    %c6_i32 = arith.constant 6 : i32
    %233 = arith.index_cast %c6_i32 : i32 to index
    %c0_64 = arith.constant 0 : index
    %c0_65 = arith.constant 0 : index
    %234 = vector.load %arg2[%233, %c0_64, %c0_65] : memref<8x8x384xbf16, #tpu.memory_space<vmem>>, vector<1x8x384xbf16>
    %235 = vector.shape_cast %234 : vector<1x8x384xbf16> to vector<8x384xbf16>
    %236 = arith.extf %235 : vector<8x384xbf16> to vector<8x384xf32>
    %237 = arith.truncf %227 : vector<8x128xf32> to vector<8x128xbf16>
    %c0_66 = arith.constant 0 : index
    %c0_67 = arith.constant 0 : index
    %c0_68 = arith.constant 0 : index
    %238 = vector.load %arg3[%c0_66, %c0_67, %c0_68] : memref<1x128x384xbf16, #tpu.memory_space<vmem>>, vector<1x128x384xbf16>
    %239 = vector.shape_cast %238 : vector<1x128x384xbf16> to vector<128x384xbf16>
    %cst_69 = arith.constant dense<0.000000e+00> : vector<8x384xf32>
    %240 = tpu.matmul %237, %239, %cst_69 {dimension_numbers = #tpu.dot_dimension_numbers<[1], [0], [0], [1], [0, 0, 1, 1], [], []>} : vector<8x128xbf16>, vector<128x384xbf16>, vector<8x384xf32> -> vector<8x384xf32>
    %241 = vector.extract_strided_slice %236 {offsets = [0, 0], sizes = [8, 128], strides = [1, 1]} : vector<8x384xf32> to vector<8x128xf32>
    %242 = vector.extract_strided_slice %240 {offsets = [0, 0], sizes = [8, 128], strides = [1, 1]} : vector<8x384xf32> to vector<8x128xf32>
    %243 = arith.addf %241, %242 : vector<8x128xf32>
    %244 = arith.negf %243 : vector<8x128xf32>
    %245 = math.exp %244 : vector<8x128xf32>
    %cst_70 = arith.constant 1.000000e+00 : f32
    %246 = vector.broadcast %cst_70 : f32 to vector<8x128xf32>
    %247 = arith.addf %246, %245 : vector<8x128xf32>
    %248 = arith.divf %246, %247 : vector<8x128xf32>
    %249 = vector.extract_strided_slice %236 {offsets = [0, 128], sizes = [8, 128], strides = [1, 1]} : vector<8x384xf32> to vector<8x128xf32>
    %250 = vector.extract_strided_slice %240 {offsets = [0, 128], sizes = [8, 128], strides = [1, 1]} : vector<8x384xf32> to vector<8x128xf32>
    %251 = arith.addf %249, %250 : vector<8x128xf32>
    %252 = arith.negf %251 : vector<8x128xf32>
    %253 = math.exp %252 : vector<8x128xf32>
    %cst_71 = arith.constant 1.000000e+00 : f32
    %254 = vector.broadcast %cst_71 : f32 to vector<8x128xf32>
    %255 = arith.addf %254, %253 : vector<8x128xf32>
    %256 = arith.divf %254, %255 : vector<8x128xf32>
    %257 = vector.extract_strided_slice %236 {offsets = [0, 256], sizes = [8, 128], strides = [1, 1]} : vector<8x384xf32> to vector<8x128xf32>
    %258 = vector.extract_strided_slice %240 {offsets = [0, 256], sizes = [8, 128], strides = [1, 1]} : vector<8x384xf32> to vector<8x128xf32>
    %259 = arith.addf %258, %3 : vector<8x128xf32>
    %260 = arith.mulf %248, %259 : vector<8x128xf32>
    %261 = arith.addf %257, %260 : vector<8x128xf32>
    %262 = math.tanh %261 : vector<8x128xf32>
    %263 = arith.subf %227, %262 : vector<8x128xf32>
    %264 = arith.mulf %256, %263 : vector<8x128xf32>
    %265 = arith.addf %262, %264 : vector<8x128xf32>
    %266 = arith.truncf %265 : vector<8x128xf32> to vector<8x128xbf16>
    %267 = arith.index_cast %c6_i32 : i32 to index
    %c0_72 = arith.constant 0 : index
    %c0_73 = arith.constant 0 : index
    %268 = vector.load %arg5[%267, %c0_72, %c0_73] : memref<8x8x128xbf16, #tpu.memory_space<vmem>>, vector<1x8x128xbf16>
    %269 = vector.shape_cast %268 : vector<1x8x128xbf16> to vector<8x128xbf16>
    %270 = vector.shape_cast %266 : vector<8x128xbf16> to vector<1x8x128xbf16>
    tpu.vector_store %arg5[%267, %c0_72, %c0_73], %270 {strides = array<i32>} : memref<8x8x128xbf16, #tpu.memory_space<vmem>>, vector<1x8x128xbf16>,
    %c7_i32 = arith.constant 7 : i32
    %271 = arith.index_cast %c7_i32 : i32 to index
    %c0_74 = arith.constant 0 : index
    %c0_75 = arith.constant 0 : index
    %272 = vector.load %arg2[%271, %c0_74, %c0_75] : memref<8x8x384xbf16, #tpu.memory_space<vmem>>, vector<1x8x384xbf16>
    %273 = vector.shape_cast %272 : vector<1x8x384xbf16> to vector<8x384xbf16>
    %274 = arith.extf %273 : vector<8x384xbf16> to vector<8x384xf32>
    %275 = arith.truncf %265 : vector<8x128xf32> to vector<8x128xbf16>
    %c0_76 = arith.constant 0 : index
    %c0_77 = arith.constant 0 : index
    %c0_78 = arith.constant 0 : index
    %276 = vector.load %arg3[%c0_76, %c0_77, %c0_78] : memref<1x128x384xbf16, #tpu.memory_space<vmem>>, vector<1x128x384xbf16>
    %277 = vector.shape_cast %276 : vector<1x128x384xbf16> to vector<128x384xbf16>
    %cst_79 = arith.constant dense<0.000000e+00> : vector<8x384xf32>
    %278 = tpu.matmul %275, %277, %cst_79 {dimension_numbers = #tpu.dot_dimension_numbers<[1], [0], [0], [1], [0, 0, 1, 1], [], []>} : vector<8x128xbf16>, vector<128x384xbf16>, vector<8x384xf32> -> vector<8x384xf32>
    %279 = vector.extract_strided_slice %274 {offsets = [0, 0], sizes = [8, 128], strides = [1, 1]} : vector<8x384xf32> to vector<8x128xf32>
    %280 = vector.extract_strided_slice %278 {offsets = [0, 0], sizes = [8, 128], strides = [1, 1]} : vector<8x384xf32> to vector<8x128xf32>
    %281 = arith.addf %279, %280 : vector<8x128xf32>
    %282 = arith.negf %281 : vector<8x128xf32>
    %283 = math.exp %282 : vector<8x128xf32>
    %cst_80 = arith.constant 1.000000e+00 : f32
    %284 = vector.broadcast %cst_80 : f32 to vector<8x128xf32>
    %285 = arith.addf %284, %283 : vector<8x128xf32>
    %286 = arith.divf %284, %285 : vector<8x128xf32>
    %287 = vector.extract_strided_slice %274 {offsets = [0, 128], sizes = [8, 128], strides = [1, 1]} : vector<8x384xf32> to vector<8x128xf32>
    %288 = vector.extract_strided_slice %278 {offsets = [0, 128], sizes = [8, 128], strides = [1, 1]} : vector<8x384xf32> to vector<8x128xf32>
    %289 = arith.addf %287, %288 : vector<8x128xf32>
    %290 = arith.negf %289 : vector<8x128xf32>
    %291 = math.exp %290 : vector<8x128xf32>
    %cst_81 = arith.constant 1.000000e+00 : f32
    %292 = vector.broadcast %cst_81 : f32 to vector<8x128xf32>
    %293 = arith.addf %292, %291 : vector<8x128xf32>
    %294 = arith.divf %292, %293 : vector<8x128xf32>
    %295 = vector.extract_strided_slice %274 {offsets = [0, 256], sizes = [8, 128], strides = [1, 1]} : vector<8x384xf32> to vector<8x128xf32>
    %296 = vector.extract_strided_slice %278 {offsets = [0, 256], sizes = [8, 128], strides = [1, 1]} : vector<8x384xf32> to vector<8x128xf32>
    %297 = arith.addf %296, %3 : vector<8x128xf32>
    %298 = arith.mulf %286, %297 : vector<8x128xf32>
    %299 = arith.addf %295, %298 : vector<8x128xf32>
    %300 = math.tanh %299 : vector<8x128xf32>
    %301 = arith.subf %265, %300 : vector<8x128xf32>
    %302 = arith.mulf %294, %301 : vector<8x128xf32>
    %303 = arith.addf %300, %302 : vector<8x128xf32>
    %304 = arith.truncf %303 : vector<8x128xf32> to vector<8x128xbf16>
    %305 = arith.index_cast %c7_i32 : i32 to index
    %c0_82 = arith.constant 0 : index
    %c0_83 = arith.constant 0 : index
    %306 = vector.load %arg5[%305, %c0_82, %c0_83] : memref<8x8x128xbf16, #tpu.memory_space<vmem>>, vector<1x8x128xbf16>
    %307 = vector.shape_cast %306 : vector<1x8x128xbf16> to vector<8x128xbf16>
    %308 = vector.shape_cast %304 : vector<8x128xbf16> to vector<1x8x128xbf16>
    tpu.vector_store %arg5[%305, %c0_82, %c0_83], %308 {strides = array<i32>} : memref<8x8x128xbf16, #tpu.memory_space<vmem>>, vector<1x8x128xbf16>,
    %c8_i32 = arith.constant 8 : i32
    %c0_84 = arith.constant 0 : index
    %c0_85 = arith.constant 0 : index
    %309 = vector.load %arg6[%c0_84, %c0_85] : memref<8x128xf32, #tpu.memory_space<vmem>>, vector<8x128xf32>
    tpu.vector_store %arg6[%c0_84, %c0_85], %303 {strides = array<i32>} : memref<8x128xf32, #tpu.memory_space<vmem>>, vector<8x128xf32>,
    return
  }
  func.func @transform_0(%arg0: i32, %arg1: i32) -> (i32, i32, i32) {
    %c0_i32 = arith.constant 0 : i32
    %c0_i32_0 = arith.constant 0 : i32
    return %arg1, %arg0, %c0_i32 : i32, i32, i32
  }
  func.func @transform_1(%arg0: i32, %arg1: i32) -> (i32, i32, i32) {
    %c0_i32 = arith.constant 0 : i32
    %c0_i32_0 = arith.constant 0 : i32
    %c0_i32_1 = arith.constant 0 : i32
    return %arg0, %c0_i32, %c0_i32_0 : i32, i32, i32
  }
  func.func @transform_2(%arg0: i32, %arg1: i32) -> (i32, i32) {
    %c0_i32 = arith.constant 0 : i32
    %c0_i32_0 = arith.constant 0 : i32
    return %arg0, %c0_i32 : i32, i32
  }
  func.func @transform_3(%arg0: i32, %arg1: i32) -> (i32, i32, i32) {
    %c0_i32 = arith.constant 0 : i32
    %c0_i32_0 = arith.constant 0 : i32
    return %arg1, %arg0, %c0_i32 : i32, i32, i32
  }
}

</mosaic_0001>

<bundles_post_ra>
// kernel: tpu_custom_call.1
= control target key start
LH: loop header
LB: loop body
LE: loop exit
PB: predicated region body
PF: predicated region fallthrough
CT: control target
= control target key end

     0   :  { %8 = vsyncpa [#allocation4], 0  ;;  %s3354_s0 = inlined_call_operand.hbm [shape: bf16[8,8,384], index: 0, kind: input, shape index: {}]   ;;  %s3355_s1 = inlined_call_operand.hbm [shape: bf16[1,128,384], index: 1, kind: input, shape index: {}]   ;;  %s3356_s2 = inlined_call_operand.hbm [shape: f32[8,128], index: 2, kind: input, shape index: {}]   ;;  %s3357_s3 = inlined_call_operand.hbm [shape: bf16[8,8,128], index: 3, kind: output, shape index: {}]  }
   0x1   :  { %9 = vsyncpa [#allocation7], 0 }
   0x2   :  { %10 = vsyncpa [#allocation5], 0  ;;  %s2979_s12 = smov [#allocation6]   ;;  %s2980_s14 = smov [#allocation3]  }
   0x3   :  { %s28_s13 = sshll.u32 %s2979_s12, 4  ;;  %s16_s15 = sshll.u32 %s2980_s14, 4  ;;  %s29_s13 = int_to_ptr.vmem [resolvable:$true] %s28_s13  ;;  %s17_s15 = int_to_ptr.vmem [resolvable:$true] %s16_s15 }
   0x4   :  { %s2901_s16 = scalar_lea.vmem %s29_s13, 3072  ;;  %p2906_p1 = scmp.lt.s32.totalorder %s29_s13, %s29_s13 }
   0x5   :  { %p2902_p0 = scmp.ne.s32.totalorder %s29_s13, %s2901_s16  ;;  %p2907_p2 = scmp.lt.s32.totalorder %s2901_s16, %s2901_s16 }
   0x7   :  { %p2908_p3 = por %p2907_p2, %p2906_p1 }
   0x9   :  { %p2909_p4 = pnand %p2908_p3, %p2902_p0 }
   0xb   :  { %2912 = shalt.err (!%p2909_p4)
}
   0xc   :  { %s2981_s17 = smov 192   ;;  %s2982_s18 = smov 12  }
   0xd   :  { %34 = dma.hbm_to_vmem [thread:$0]  %s3355_s1, 3072, %s29_s13, [#allocation7], %s2981_s17, %s2981_s17, %s2982_s18  }
   0xe   :  { %s2921_s21 = scalar_lea.vmem %s17_s15, 1536  ;;  %p2926_p6 = scmp.lt.s32.totalorder %s17_s15, %s17_s15 }
   0xf   :  { %p2922_p5 = scmp.ne.s32.totalorder %s17_s15, %s2921_s21  ;;  %p2927_p7 = scmp.lt.s32.totalorder %s2921_s21, %s2921_s21 }
  0x11   :  { %p2928_p8 = por %p2927_p7, %p2926_p6 }
  0x13   :  { %p2929_p9 = pnand %p2928_p8, %p2922_p5 }
  0x15   :  { %2932 = shalt.err (!%p2929_p9)
}
  0x16   :  { %22 = dma.hbm_to_vmem [thread:$0]  %s3354_s0, 1536, %s17_s15, [#allocation4], %s2981_s17, %s2981_s17, %s2982_s18  }
  0x17   :  { %s2983_s24 = smov [#allocation8]  }
  0x18   :  { %s41_s25 = sshll.u32 %s2983_s24, 4  ;;  %s42_s25 = int_to_ptr.vmem [resolvable:$true] %s41_s25 }
  0x19   :  { %s2941_s26 = scalar_lea.vmem %s42_s25, 128  ;;  %p2946_p11 = scmp.lt.s32.totalorder %s42_s25, %s42_s25 }
  0x1a   :  { %p2942_p10 = scmp.ne.s32.totalorder %s42_s25, %s2941_s26  ;;  %p2947_p12 = scmp.lt.s32.totalorder %s2941_s26, %s2941_s26 }
  0x1c   :  { %p2948_p13 = por %p2947_p12, %p2946_p11 }
  0x1e   :  { %p2949_p0 = pnand %p2948_p13, %p2942_p10 }
  0x20   :  { %2952 = shalt.err (!%p2949_p0)
}
  0x21   :  { %44 = dma.hbm_to_vmem [thread:$0]  %s3356_s2, 128, %s42_s25, [#allocation7]  }
  0x22   :  { %2973 = dma.done.wait [#allocation4], 1536  }
  0x23   :  { %2974 = vsyncadd [#allocation4], 4294965760 }
  0x24   :  { %2975 = dma.done.wait [#allocation7], 3200  }
  0x25   :  { %2976 = vsyncadd [#allocation7], 4294964096  ;;  %v2984_v0 = vmov 0.0   ;;  %v2985_v1 = vmov 0   ;;  %vm2986_vm0 = vmmov 0   ;;  %v2987_v25 = vmov 0.0|0.0  }
  0x26   :  { %2528 = vmatprep.subr.bf16.mxu1 %v2984_v0  ;;  %260 = vmatprep.mubr.bf16.mxu0 %v2985_v1  ;;  %v3024_v2 = vld [vmem:[#allocation6 + $0xac] ss:$12 sps:$4 sm:$0xff]   ;;  %v3026_v3 = vld [vmem:[#allocation6 + $0xa8] ss:$12 sps:$4 sm:$0xff]   ;;  %v3032_v5 = vld [vmem:[#allocation6 + $0x90] ss:$12 sps:$4 sm:$0xff]  }
  0x27   :  { %2544 = vmatprep.mubr.msk.bf16.mxu1 %vm2986_vm0, %v2984_v0  ;;  %228 = vmatprep.subr.bf16.mxu0 %v3024_v2  ;;  %v3029_v4 = vld [vmem:[#allocation6 + $0x94] ss:$12 sps:$4 sm:$0xff]   ;;  %v3035_v6 = vld [vmem:[#allocation6 + $0x7c] ss:$12 sps:$4 sm:$0xff]   ;;  %v3038_v7 = vld [vmem:[#allocation6 + $0x78] ss:$12 sps:$4 sm:$0xff]  }
  0x28   :  { %229 = vmatpush1.bf16.msra.mxu0 %v3026_v3  ;;  %v3041_v8 = vld [vmem:[#allocation6 + $0x64] ss:$12 sps:$4 sm:$0xff]   ;;  %v3044_v10 = vld [vmem:[#allocation6 + $0x60] ss:$12 sps:$4 sm:$0xff]   ;;  %v3050_v13 = vld [vmem:[#allocation6 + $0x48] ss:$12 sps:$4 sm:$0xff]  }
  0x29   :  { %230 = vmatprep.subr.bf16.mxu0 %v3029_v4  ;;  %v2721_v9 = vld [vmem:[#allocation6 + $0xb0] ss:$12 sps:$4 sm:$0xff]   ;;  %v3046_v11 = vld [vmem:[#allocation6 + $0x4c] ss:$12 sps:$4 sm:$0xff]   ;;  %v3053_v14 = vld [vmem:[#allocation6 + $0x34] ss:$12 sps:$4 sm:$0xff]  }
  0x2a   :  { %2529 = vmatpush3.bf16.msra.mxu1 %v2721_v9  ;;  %v2725_v12 = vld [vmem:[#allocation6 + $0x98] ss:$12 sps:$4 sm:$0xff]   ;;  %v2726_v15 = vld [vmem:[#allocation6 + $0x80] ss:$12 sps:$4 sm:$0xff]   ;;  %v3056_v16 = vld [vmem:[#allocation6 + $0x30] ss:$12 sps:$4 sm:$0xff]  }
  0x2b   :  { %2530 = vmatprep.subr.bf16.mxu1 %v2984_v0  ;;  %v3059_v17 = vld [vmem:[#allocation6 + $0x1c] ss:$12 sps:$4 sm:$0xff]   ;;  %v3063_v19 = vld [vmem:[#allocation6 + $0x18] ss:$12 sps:$4 sm:$0xff]   ;;  %v3070_v22 = vld [vmem:[#allocation6] ss:$12 sps:$4 sm:$0xff]  }
  0x2c   :  { %231 = vmatpush1.bf16.msra.mxu0 %v3032_v5  ;;  %v2727_v18 = vld [vmem:[#allocation6 + $0x68] ss:$12 sps:$4 sm:$0xff]   ;;  %v3066_v20 = vld [vmem:[#allocation6 + $0x4] ss:$12 sps:$4 sm:$0xff]   ;;  %v2730_v24 = vld [vmem:[#allocation6 + $0x20] ss:$12 sps:$4 sm:$0xff]  }
  0x2d   :  { %232 = vmatprep.subr.bf16.mxu0 %v3035_v6  ;;  %v2728_v21 = vld [vmem:[#allocation6 + $0x50] ss:$12 sps:$4 sm:$0xff]   ;;  %v2729_v23 = vld [vmem:[#allocation6 + $0x38] ss:$12 sps:$4 sm:$0xff]   ;;  %v2731_v26 = vld [vmem:[#allocation6 + $0x8] ss:$12 sps:$4 sm:$0xff]  }
  0x2e   :  { %2531 = vmatpush3.bf16.msra.mxu1 %v2725_v12  ;;  %v2732_v27 = vld [vmem:[#allocation6 + $0xb0] ss:$12 sps:$4 sm:$0xff]   ;;  %v2733_v28 = vld [vmem:[#allocation6 + $0x98] ss:$12 sps:$4 sm:$0xff]   ;;  %v2734_v29 = vld [vmem:[#allocation6 + $0x80] ss:$12 sps:$4 sm:$0xff]  }
  0x2f   :  { %2532 = vmatprep.subr.bf16.mxu1 %v2984_v0  ;;  %v2735_v30 = vld [vmem:[#allocation6 + $0x68] ss:$12 sps:$4 sm:$0xff]   ;;  %v2736_v31 = vld [vmem:[#allocation6 + $0x50] ss:$12 sps:$4 sm:$0xff]   ;;  %v2737_v32 = vld [vmem:[#allocation6 + $0x38] ss:$12 sps:$4 sm:$0xff]  }
  0x30   :  { %233 = vmatpush1.bf16.msra.mxu0 %v3038_v7  ;;  %v2738_v33 = vld [vmem:[#allocation6 + $0x20] ss:$12 sps:$4 sm:$0xff]   ;;  %v2739_v34 = vld [vmem:[#allocation6 + $0x8] ss:$12 sps:$4 sm:$0xff]   ;;  %s2988_s0 = smov [#allocation9]  }
  0x31   :  { %234 = vmatprep.subr.bf16.mxu0 %v3041_v8  ;;  %v62_v35 = vld [vmem:[#allocation3] sm:$0xff]  ;;  %v3110_v53 = vld [vmem:[#allocation3 + $0x8] ss:$12 sps:$4 sm:$0xff]   ;;  %s2235_s2 = sshll.u32 %s2988_s0, 4  ;;  %s2236_s2 = int_to_ptr.vmem [resolvable:$true] %s2235_s2 }
  0x32   :  { %2533 = vmatpush3.bf16.msra.mxu1 %v2726_v15  ;;  %v64_v36 = vunpack.c.l.bf16 %v62_v35  ;;  %v65_v43 = vunpack.c.h.bf16 %v62_v35  ;;  %v3108_v52 = vld [vmem:[#allocation8] sm:$0xff]  ;;  %v66_v56 = vunpack.c.l.bf16 %v3110_v53  ;;  %s2953_s28 = scalar_lea.vmem %s2236_s2, 512  ;;  %p2958_p2 = scmp.lt.s32.totalorder %s2236_s2, %s2236_s2 }
  0x33   :  { %2534 = vmatprep.subr.bf16.mxu1 %v2984_v0  ;;  %p2954_p1 = scmp.ne.s32.totalorder %s2236_s2, %s2953_s28  ;;  %p2959_p3 = scmp.lt.s32.totalorder %s2953_s28, %s2953_s28 }
  0x34   :  { %235 = vmatpush1.bf16.msra.mxu0 %v3044_v10 }
  0x35   :  { %236 = vmatprep.subr.bf16.mxu0 %v3046_v11  ;;  %p2960_p4 = por %p2959_p3, %p2958_p2 }
  0x36   :  { %2535 = vmatpush3.bf16.msra.mxu1 %v2727_v18  ;;  %v2740_v18 = vld [vmem:[#allocation6 + $0xb0] ss:$12 sps:$4 sm:$0xff]  }
  0x37   :  { %2536 = vmatprep.subr.bf16.mxu1 %v2984_v0  ;;  %p2961_p5 = pnand %p2960_p4, %p2954_p1 }
  0x38   :  { %237 = vmatpush1.bf16.msra.mxu0 %v3050_v13 }
  0x39   :  { %238 = vmatprep.subr.bf16.mxu0 %v3053_v14 }
  0x3a   :  { %2537 = vmatpush3.bf16.msra.mxu1 %v2728_v21  ;;  %v2741_v21 = vld [vmem:[#allocation6 + $0x98] ss:$12 sps:$4 sm:$0xff]  }
  0x3b   :  { %2538 = vmatprep.subr.bf16.mxu1 %v2984_v0 }
  0x3c   :  { %239 = vmatpush1.bf16.msra.mxu0 %v3056_v16 }
  0x3d   :  { %240 = vmatprep.subr.bf16.mxu0 %v3059_v17 }
  0x3e   :  { %2539 = vmatpush3.bf16.msra.mxu1 %v2729_v23  ;;  %v2742_v23 = vld [vmem:[#allocation6 + $0x80] ss:$12 sps:$4 sm:$0xff]  }
  0x3f   :  { %2540 = vmatprep.subr.bf16.mxu1 %v2984_v0 }
  0x40   :  { %241 = vmatpush1.bf16.msra.mxu0 %v3063_v19 }
  0x41   :  { %242 = vmatprep.subr.bf16.mxu0 %v3066_v20 }
  0x42   :  { %2541 = vmatpush3.bf16.msra.mxu1 %v2730_v24  ;;  %v2743_v24 = vld [vmem:[#allocation6 + $0x68] ss:$12 sps:$4 sm:$0xff]  }
  0x43   :  { %2542 = vmatprep.subr.bf16.mxu1 %v2984_v0 }
  0x44   :  { %243 = vmatpush1.bf16.msra.mxu0 %v3070_v22 }
  0x45   :  { %498 = vmatprep.subr.bf16.mxu0 %v3024_v2 }
  0x46   :  { %2543 = vmatpush3.bf16.msra.mxu1 %v2731_v26  ;;  %v2745_v26 = vld [vmem:[#allocation6 + $0x38] ss:$12 sps:$4 sm:$0xff]  }
  0x47   :  { %261 = vmatmul.mubr.bf16.vlgmr.msra.gmra.mxu0 %v2987_v25  ;;  %2548 = vmatprep.subr.bf16.mxu1 %v2984_v0 }
  0x48   :  { %499 = vmatpush1.bf16.msra.mxu0 %v3026_v3  ;;  %530 = vmatprep.mubr.bf16.mxu0 %v2985_v1 }
  0x49   :  { %500 = vmatprep.subr.bf16.mxu0 %v3029_v4  ;;  %2545 = vmatmul.mubr.bf16.vlgmr.msra.gmra.mxu1 %v2987_v25  ;;  %v2744_v25 = vld [vmem:[#allocation6 + $0x50] ss:$12 sps:$4 sm:$0xff]  }
  0x4a   :  { %2564 = vmatprep.mubr.msk.bf16.mxu1 %vm2986_vm0, %v2984_v0  ;;  %2549 = vmatpush3.bf16.msra.mxu1 %v2732_v27  ;;  %v2746_v27 = vld [vmem:[#allocation6 + $0x20] ss:$12 sps:$4 sm:$0xff]  }
  0x4b   :  { %2550 = vmatprep.subr.bf16.mxu1 %v2984_v0 }
  0x4c   :  { %501 = vmatpush1.bf16.msra.mxu0 %v3032_v5 }
  0x4d   :  { %502 = vmatprep.subr.bf16.mxu0 %v3035_v6 }
  0x4e   :  { %2551 = vmatpush3.bf16.msra.mxu1 %v2733_v28  ;;  %v2747_v28 = vld [vmem:[#allocation6 + $0x8] ss:$12 sps:$4 sm:$0xff]  }
  0x4f   :  { %2552 = vmatprep.subr.bf16.mxu1 %v2984_v0 }
  0x50   :  { %503 = vmatpush1.bf16.msra.mxu0 %v3038_v7 }
  0x51   :  { %504 = vmatprep.subr.bf16.mxu0 %v3041_v8 }
  0x52   :  { %2553 = vmatpush3.bf16.msra.mxu1 %v2734_v29  ;;  %v333_v29 = vld [vmem:[#allocation3 + $0xc] sm:$0xff] }
  0x53   :  { %2554 = vmatprep.subr.bf16.mxu1 %v2984_v0 }
  0x54   :  { %505 = vmatpush1.bf16.msra.mxu0 %v3044_v10 }
  0x55   :  { %506 = vmatprep.subr.bf16.mxu0 %v3046_v11 }
  0x56   :  { %2555 = vmatpush3.bf16.msra.mxu1 %v2735_v30  ;;  %v335_v30 = vunpack.c.l.bf16 %v333_v29 }
  0x57   :  { %2556 = vmatprep.subr.bf16.mxu1 %v2984_v0 }
  0x58   :  { %507 = vmatpush1.bf16.msra.mxu0 %v3050_v13 }
  0x59   :  { %508 = vmatprep.subr.bf16.mxu0 %v3053_v14 }
  0x5a   :  { %2557 = vmatpush3.bf16.msra.mxu1 %v2736_v31 }
  0x5b   :  { %2558 = vmatprep.subr.bf16.mxu1 %v2984_v0 }
  0x5c   :  { %509 = vmatpush1.bf16.msra.mxu0 %v3056_v16 }
  0x5d   :  { %510 = vmatprep.subr.bf16.mxu0 %v3059_v17 }
  0x5e   :  { %2559 = vmatpush3.bf16.msra.mxu1 %v2737_v32 }
  0x5f   :  { %2560 = vmatprep.subr.bf16.mxu1 %v2984_v0 }
  0x60   :  { %511 = vmatpush1.bf16.msra.mxu0 %v3063_v19 }
  0x61   :  { %512 = vmatprep.subr.bf16.mxu0 %v3066_v20 }
  0x62   :  { %2561 = vmatpush3.bf16.msra.mxu1 %v2738_v33 }
  0x63   :  { %2562 = vmatprep.subr.bf16.mxu1 %v2984_v0 }
  0x64   :  { %513 = vmatpush1.bf16.msra.mxu0 %v3070_v22 }
  0x65   :  { %769 = vmatprep.subr.bf16.mxu0 %v3024_v2 }
  0x66   :  { %2563 = vmatpush3.bf16.msra.mxu1 %v2739_v34 }
  0x67   :  { %2568 = vmatprep.subr.bf16.mxu1 %v2984_v0 }
 0x107   :  { %v262_v37 = vpop.f32.mrf.mxu0 }
 0x108   :  { %v309_v38 = vadd.f32 %v262_v37, %v64_v36 }
 0x109   :  { %v264_v39 = vpop.f32.mrf.mxu0  ;;  %v303_v44 = vpop.f32.mrf.mxu1 }
 0x10a   :  { %v2272_v40 = vmul.f32 -1.442695, %v309_v38  ;;  %v316_v46 = vadd.f32 %v264_v39, %v65_v43  ;;  %v323_v54 = vadd.f32 %v303_v44, %v3108_v52 }
 0x10b   :  { %v266_v41 = vpop.f32.mrf.mxu0  ;;  %v2546_v45 = vpop.f32.mrf.mxu1 }
 0x10c   :  { %2812 = vpow2.f32 %v2272_v40  ;;  %v2273_v49 = vmul.f32 -1.442695, %v316_v46  ;;  %v336_v41 = vunpack.c.h.bf16 %v333_v29 }
 0x10d   :  { %v267_v42 = vpop.f32.mrf.mxu0  ;;  %v306_v47 = vpop.f32.mrf.mxu1 }
 0x10e   :  { %2814 = vpow2.f32 %v2273_v49  ;;  %v337_v47 = vunpack.c.h.bf16 %v3110_v53  ;;  %v2748_v53 = vld [vmem:[#allocation6 + $0xb0] ss:$12 sps:$4 sm:$0xff]  }
 0x10f   :  { %v2547_v48 = vpop.f32.mrf.mxu1 }
 0x119   :  { %v2813_v50 = vpop.eup %2812 }
 0x11a   :  { %v313_v51 = vadd.f32 1.0, %v2813_v50 }
 0x11b   :  { %v2815_v55 = vpop.eup %2814 }
 0x11c   :  { %2816 = vrcp.f32 %v313_v51  ;;  %v320_v59 = vadd.f32 1.0, %v2815_v55 }
 0x129   :  { %v2817_v57 = vpop.eup %2816 }
 0x12a   :  { %v324_v58 = vmul.f32 %v2817_v57, %v323_v54 }
 0x12c   :  { %v325_v60 = vadd.f32 %v324_v58, %v66_v56 }
 0x12e   :  { %2818 = vtanh.f32 %v325_v60 }
 0x12f   :  { %2820 = vrcp.f32 %v320_v59 }
 0x13b   :  { %v2819_v61 = vpop.eup %2818 }
 0x13c   :  { %v327_v62 = vsub.f32 0.0, %v2819_v61  ;;  %v2821_v63 = vpop.eup %2820 }
 0x13e   :  { %v328_v9 = vmul.f32 %v2821_v63, %v327_v62 }
 0x140   :  { %v3114_v12 = vadd.f32 %v2819_v61, %v328_v9 }
 0x142   :  { %v330_v15 = vpack.c.bf16 %v3114_v12, %v3114_v12 }
 0x144   :  { %331 = vst [vmem:[#allocation9] sm:$0xf] %v330_v15  ;;  %531 = vmatmul.mubr.bf16.vlgmr.msra.gmra.mxu0 %v330_v15  ;;  %2565 = vmatmul.mubr.bf16.vlgmr.msra.gmra.mxu1 %v330_v15 }
 0x145   :  { %770 = vmatpush1.bf16.msra.mxu0 %v3026_v3  ;;  %801 = vmatprep.mubr.bf16.mxu0 %v2985_v1 }
 0x146   :  { %771 = vmatprep.subr.bf16.mxu0 %v3029_v4  ;;  %2584 = vmatprep.mubr.msk.bf16.mxu1 %vm2986_vm0, %v2984_v0 }
 0x147   :  { %2569 = vmatpush3.bf16.msra.mxu1 %v2740_v18 }
 0x148   :  { %2570 = vmatprep.subr.bf16.mxu1 %v2984_v0 }
 0x149   :  { %772 = vmatpush1.bf16.msra.mxu0 %v3032_v5 }
 0x14a   :  { %773 = vmatprep.subr.bf16.mxu0 %v3035_v6 }
 0x14b   :  { %2571 = vmatpush3.bf16.msra.mxu1 %v2741_v21 }
 0x14c   :  { %2572 = vmatprep.subr.bf16.mxu1 %v2984_v0 }
 0x14d   :  { %774 = vmatpush1.bf16.msra.mxu0 %v3038_v7 }
 0x14e   :  { %775 = vmatprep.subr.bf16.mxu0 %v3041_v8 }
 0x14f   :  { %2573 = vmatpush3.bf16.msra.mxu1 %v2742_v23 }
 0x150   :  { %2574 = vmatprep.subr.bf16.mxu1 %v2984_v0 }
 0x151   :  { %776 = vmatpush1.bf16.msra.mxu0 %v3044_v10 }
 0x152   :  { %777 = vmatprep.subr.bf16.mxu0 %v3046_v11 }
 0x153   :  { %2575 = vmatpush3.bf16.msra.mxu1 %v2743_v24 }
 0x154   :  { %2576 = vmatprep.subr.bf16.mxu1 %v2984_v0 }
 0x155   :  { %778 = vmatpush1.bf16.msra.mxu0 %v3050_v13 }
 0x156   :  { %779 = vmatprep.subr.bf16.mxu0 %v3053_v14 }
 0x157   :  { %2577 = vmatpush3.bf16.msra.mxu1 %v2744_v25 }
 0x158   :  { %2578 = vmatprep.subr.bf16.mxu1 %v2984_v0 }
 0x159   :  { %780 = vmatpush1.bf16.msra.mxu0 %v3056_v16 }
 0x15a   :  { %781 = vmatprep.subr.bf16.mxu0 %v3059_v17 }
 0x15b   :  { %2579 = vmatpush3.bf16.msra.mxu1 %v2745_v26 }
 0x15c   :  { %2580 = vmatprep.subr.bf16.mxu1 %v2984_v0 }
 0x15d   :  { %782 = vmatpush1.bf16.msra.mxu0 %v3063_v19 }
 0x15e   :  { %783 = vmatprep.subr.bf16.mxu0 %v3066_v20 }
 0x15f   :  { %2581 = vmatpush3.bf16.msra.mxu1 %v2746_v27 }
 0x160   :  { %2582 = vmatprep.subr.bf16.mxu1 %v2984_v0 }
 0x161   :  { %784 = vmatpush1.bf16.msra.mxu0 %v3070_v22 }
 0x162   :  { %1040 = vmatprep.subr.bf16.mxu0 %v3024_v2 }
 0x163   :  { %2583 = vmatpush3.bf16.msra.mxu1 %v2747_v28 }
 0x164   :  { %2588 = vmatprep.subr.bf16.mxu1 %v2984_v0 }
 0x204   :  { %v532_v31 = vpop.f32.mrf.mxu0  ;;  %v573_v32 = vpop.f32.mrf.mxu1 }
 0x205   :  { %v579_v33 = vadd.f32 %v532_v31, %v335_v30  ;;  %v593_v48 = vadd.f32 %v573_v32, %v3108_v52  ;;  %v3179_v30 = vld [vmem:[#allocation3 + $0x20] ss:$12 sps:$4 sm:$0xff]  }
 0x206   :  { %v534_v34 = vpop.f32.mrf.mxu0  ;;  %v2566_v35 = vpop.f32.mrf.mxu1  ;;  %v608_v32 = vunpack.c.l.bf16 %v3179_v30 }
 0x207   :  { %v2298_v36 = vmul.f32 -1.442695, %v579_v33  ;;  %v586_v42 = vadd.f32 %v534_v34, %v336_v41 }
 0x208   :  { %v536_v37 = vpop.f32.mrf.mxu0  ;;  %v576_v38 = vpop.f32.mrf.mxu1 }
 0x209   :  { %2822 = vpow2.f32 %v2298_v36  ;;  %v2299_v43 = vmul.f32 -1.442695, %v586_v42 }
 0x20a   :  { %v537_v39 = vpop.f32.mrf.mxu0  ;;  %v2567_v40 = vpop.f32.mrf.mxu1 }
 0x20b   :  { %2824 = vpow2.f32 %v2299_v43 }
 0x216   :  { %v2823_v44 = vpop.eup %2822 }
 0x217   :  { %v583_v45 = vadd.f32 1.0, %v2823_v44  ;;  %v2756_v44 = vld [vmem:[#allocation6 + $0xb0] ss:$12 sps:$4 sm:$0xff]  }
 0x218   :  { %v2825_v46 = vpop.eup %2824 }
 0x219   :  { %2826 = vrcp.f32 %v583_v45  ;;  %v590_v54 = vadd.f32 1.0, %v2825_v46  ;;  %v3209_v45 = vld [vmem:[#allocation6 + $0x30] ss:$12 sps:$4 sm:$0xff]  }
 0x21a   :  { %v3213_v46 = vld [vmem:[#allocation6 + $0x1c] ss:$12 sps:$4 sm:$0xff]  }
 0x226   :  { %v2827_v49 = vpop.eup %2826 }
 0x227   :  { %v594_v50 = vmul.f32 %v2827_v49, %v593_v48  ;;  %v3216_v48 = vld [vmem:[#allocation6 + $0x18] ss:$12 sps:$4 sm:$0xff]  }
 0x228   :  { %v3220_v49 = vld [vmem:[#allocation6 + $0x4] ss:$12 sps:$4 sm:$0xff]  }
 0x229   :  { %v595_v51 = vadd.f32 %v594_v50, %v337_v47  ;;  %v2767_v47 = vld [vmem:[#allocation6 + $0x38] ss:$12 sps:$4 sm:$0xff]   ;;  %v2771_v50 = vld [vmem:[#allocation6 + $0x20] ss:$12 sps:$4 sm:$0xff]  }
 0x22b   :  { %2828 = vtanh.f32 %v595_v51  ;;  %v3223_v51 = vld [vmem:[#allocation6] ss:$12 sps:$4 sm:$0xff]  }
 0x22c   :  { %2830 = vrcp.f32 %v590_v54  ;;  %v2775_v54 = vld [vmem:[#allocation6 + $0x8] ss:$12 sps:$4 sm:$0xff]  }
 0x238   :  { %v2829_v55 = vpop.eup %2828 }
 0x239   :  { %v597_v56 = vsub.f32 %v3114_v12, %v2829_v55  ;;  %v2831_v57 = vpop.eup %2830 }
 0x23b   :  { %v598_v58 = vmul.f32 %v2831_v57, %v597_v56 }
 0x23d   :  { %v3148_v59 = vadd.f32 %v2829_v55, %v598_v58  ;;  %v875_v55 = vld [vmem:[#allocation3 + $0x24] sm:$0xff] }
 0x23e   :  { %v877_v56 = vunpack.c.l.bf16 %v875_v55 }
 0x23f   :  { %v600_v60 = vpack.c.bf16 %v3148_v59, %v3148_v59 }
 0x241   :  { %602 = vst [vmem:[#allocation9 + $0x4] sm:$0xf] %v600_v60  ;;  %802 = vmatmul.mubr.bf16.vlgmr.msra.gmra.mxu0 %v600_v60  ;;  %2585 = vmatmul.mubr.bf16.vlgmr.msra.gmra.mxu1 %v600_v60 }
 0x242   :  { %1041 = vmatpush1.bf16.msra.mxu0 %v3026_v3  ;;  %1072 = vmatprep.mubr.bf16.mxu0 %v2985_v1 }
 0x243   :  { %1042 = vmatprep.subr.bf16.mxu0 %v3029_v4  ;;  %2604 = vmatprep.mubr.msk.bf16.mxu1 %vm2986_vm0, %v2984_v0 }
 0x244   :  { %2589 = vmatpush3.bf16.msra.mxu1 %v2748_v53 }
 0x245   :  { %2590 = vmatprep.subr.bf16.mxu1 %v2984_v0 }
 0x246   :  { %1043 = vmatpush1.bf16.msra.mxu0 %v3032_v5 }
 0x247   :  { %1044 = vmatprep.subr.bf16.mxu0 %v3035_v6 }
 0x24a   :  { %1045 = vmatpush1.bf16.msra.mxu0 %v3038_v7 }
 0x24b   :  { %1046 = vmatprep.subr.bf16.mxu0 %v3041_v8 }
 0x24e   :  { %1047 = vmatpush1.bf16.msra.mxu0 %v3044_v10 }
 0x24f   :  { %1048 = vmatprep.subr.bf16.mxu0 %v3046_v11  ;;  %v2749_v11 = vld [vmem:[#allocation6 + $0x98] ss:$12 sps:$4 sm:$0xff]  }
 0x250   :  { %2591 = vmatpush3.bf16.msra.mxu1 %v2749_v11 }
 0x251   :  { %2592 = vmatprep.subr.bf16.mxu1 %v2984_v0 }
 0x252   :  { %1049 = vmatpush1.bf16.msra.mxu0 %v3050_v13  ;;  %v2750_v13 = vld [vmem:[#allocation6 + $0x80] ss:$12 sps:$4 sm:$0xff]  }
 0x253   :  { %1050 = vmatprep.subr.bf16.mxu0 %v3053_v14  ;;  %v2751_v14 = vld [vmem:[#allocation6 + $0x68] ss:$12 sps:$4 sm:$0xff]  }
 0x254   :  { %2593 = vmatpush3.bf16.msra.mxu1 %v2750_v13 }
 0x255   :  { %2594 = vmatprep.subr.bf16.mxu1 %v2984_v0 }
 0x256   :  { %1051 = vmatpush1.bf16.msra.mxu0 %v3056_v16  ;;  %v2752_v16 = vld [vmem:[#allocation6 + $0x50] ss:$12 sps:$4 sm:$0xff]  }
 0x257   :  { %1052 = vmatprep.subr.bf16.mxu0 %v3059_v17  ;;  %v2753_v17 = vld [vmem:[#allocation6 + $0x38] ss:$12 sps:$4 sm:$0xff]  }
 0x258   :  { %2595 = vmatpush3.bf16.msra.mxu1 %v2751_v14 }
 0x259   :  { %2596 = vmatprep.subr.bf16.mxu1 %v2984_v0 }
 0x25a   :  { %1053 = vmatpush1.bf16.msra.mxu0 %v3063_v19  ;;  %v2755_v19 = vld [vmem:[#allocation6 + $0x8] ss:$12 sps:$4 sm:$0xff]  }
 0x25b   :  { %1054 = vmatprep.subr.bf16.mxu0 %v3066_v20  ;;  %v604_v20 = vld [vmem:[#allocation3 + $0x18] sm:$0xff] }
 0x25c   :  { %2597 = vmatpush3.bf16.msra.mxu1 %v2752_v16  ;;  %v607_v25 = vunpack.c.h.bf16 %v604_v20 }
 0x25d   :  { %2598 = vmatprep.subr.bf16.mxu1 %v2984_v0 }
 0x25e   :  { %1055 = vmatpush1.bf16.msra.mxu0 %v3070_v22  ;;  %v606_v22 = vunpack.c.l.bf16 %v604_v20 }
 0x25f   :  { %1311 = vmatprep.subr.bf16.mxu0 %v3024_v2  ;;  %v2754_v2 = vld [vmem:[#allocation6 + $0x20] ss:$12 sps:$4 sm:$0xff]  }
 0x260   :  { %2599 = vmatpush3.bf16.msra.mxu1 %v2753_v17 }
 0x261   :  { %2600 = vmatprep.subr.bf16.mxu1 %v2984_v0 }
 0x264   :  { %2601 = vmatpush3.bf16.msra.mxu1 %v2754_v2  ;;  %v878_v2 = vunpack.c.h.bf16 %v875_v55 }
 0x265   :  { %2602 = vmatprep.subr.bf16.mxu1 %v2984_v0 }
 0x268   :  { %2603 = vmatpush3.bf16.msra.mxu1 %v2755_v19 }
 0x269   :  { %2608 = vmatprep.subr.bf16.mxu1 %v2984_v0 }
 0x301   :  { %v803_v61 = vpop.f32.mrf.mxu0  ;;  %v844_v62 = vpop.f32.mrf.mxu1 }
 0x302   :  { %v850_v63 = vadd.f32 %v803_v61, %v606_v22  ;;  %v864_v33 = vadd.f32 %v844_v62, %v3108_v52 }
 0x303   :  { %v805_v9 = vpop.f32.mrf.mxu0  ;;  %v2586_v12 = vpop.f32.mrf.mxu1 }
 0x304   :  { %v2324_v15 = vmul.f32 -1.442695, %v850_v63  ;;  %v857_v26 = vadd.f32 %v805_v9, %v607_v25  ;;  %v879_v63 = vunpack.c.h.bf16 %v3179_v30  ;;  %v3242_v30 = vld [vmem:[#allocation6 + $0xa8] ss:$12 sps:$4 sm:$0xff]  }
 0x305   :  { %v807_v18 = vpop.f32.mrf.mxu0  ;;  %v847_v21 = vpop.f32.mrf.mxu1 }
 0x306   :  { %2832 = vpow2.f32 %v2324_v15  ;;  %v2325_v27 = vmul.f32 -1.442695, %v857_v26 }
 0x307   :  { %v808_v23 = vpop.f32.mrf.mxu0  ;;  %v2587_v24 = vpop.f32.mrf.mxu1 }
 0x308   :  { %2834 = vpow2.f32 %v2325_v27 }
 0x313   :  { %v2833_v28 = vpop.eup %2832 }
 0x314   :  { %v854_v29 = vadd.f32 1.0, %v2833_v28 }
 0x315   :  { %v2835_v31 = vpop.eup %2834 }
 0x316   :  { %2836 = vrcp.f32 %v854_v29  ;;  %v861_v37 = vadd.f32 1.0, %v2835_v31  ;;  %v3240_v29 = vld [vmem:[#allocation6 + $0xac] ss:$12 sps:$4 sm:$0xff]   ;;  %v2779_v31 = vld [vmem:[#allocation6 + $0xb0] ss:$12 sps:$4 sm:$0xff]  }
 0x323   :  { %v2837_v34 = vpop.eup %2836 }
 0x324   :  { %v865_v35 = vmul.f32 %v2837_v34, %v864_v33  ;;  %v3249_v33 = vld [vmem:[#allocation6 + $0x90] ss:$12 sps:$4 sm:$0xff]   ;;  %v2783_v34 = vld [vmem:[#allocation6 + $0x98] ss:$12 sps:$4 sm:$0xff]  }
 0x326   :  { %v866_v36 = vadd.f32 %v865_v35, %v608_v32  ;;  %v3246_v32 = vld [vmem:[#allocation6 + $0x94] ss:$12 sps:$4 sm:$0xff]   ;;  %v3253_v35 = vld [vmem:[#allocation6 + $0x7c] ss:$12 sps:$4 sm:$0xff]  }
 0x328   :  { %2838 = vtanh.f32 %v866_v36  ;;  %v3256_v36 = vld [vmem:[#allocation6 + $0x78] ss:$12 sps:$4 sm:$0xff]  }
 0x329   :  { %2840 = vrcp.f32 %v861_v37  ;;  %v2787_v37 = vld [vmem:[#allocation6 + $0x80] ss:$12 sps:$4 sm:$0xff]  }
 0x335   :  { %v2839_v38 = vpop.eup %2838 }
 0x336   :  { %v868_v39 = vsub.f32 %v3148_v59, %v2839_v38  ;;  %v2841_v40 = vpop.eup %2840 }
 0x338   :  { %v869_v41 = vmul.f32 %v2841_v40, %v868_v39  ;;  %v3262_v39 = vld [vmem:[#allocation6 + $0x64] ss:$12 sps:$4 sm:$0xff]   ;;  %v2791_v40 = vld [vmem:[#allocation6 + $0x68] ss:$12 sps:$4 sm:$0xff]  }
 0x33a   :  { %v3184_v42 = vadd.f32 %v2839_v38, %v869_v41  ;;  %v3260_v38 = vld [vmem:[#allocation6 + $0x60] ss:$12 sps:$4 sm:$0xff]   ;;  %v2792_v41 = vld [vmem:[#allocation6 + $0x50] ss:$12 sps:$4 sm:$0xff]  }
 0x33c   :  { %v871_v43 = vpack.c.bf16 %v3184_v42, %v3184_v42 }
 0x33e   :  { %873 = vst [vmem:[#allocation9 + $0x8] sm:$0xf] %v871_v43  ;;  %1073 = vmatmul.mubr.bf16.vlgmr.msra.gmra.mxu0 %v871_v43  ;;  %2605 = vmatmul.mubr.bf16.vlgmr.msra.gmra.mxu1 %v871_v43  ;;  %v2794_v43 = vld [vmem:[#allocation6 + $0x20] ss:$12 sps:$4 sm:$0xff]  }
 0x33f   :  { %1312 = vmatpush1.bf16.msra.mxu0 %v3026_v3  ;;  %1343 = vmatprep.mubr.bf16.mxu0 %v2985_v1  ;;  %v2757_v3 = vld [vmem:[#allocation6 + $0x98] ss:$12 sps:$4 sm:$0xff]  }
 0x340   :  { %1313 = vmatprep.subr.bf16.mxu0 %v3029_v4  ;;  %2624 = vmatprep.mubr.msk.bf16.mxu1 %vm2986_vm0, %v2984_v0  ;;  %v2758_v4 = vld [vmem:[#allocation6 + $0x80] ss:$12 sps:$4 sm:$0xff]  }
 0x341   :  { %2609 = vmatpush3.bf16.msra.mxu1 %v2756_v44  ;;  %v2795_v44 = vld [vmem:[#allocation6 + $0x8] ss:$12 sps:$4 sm:$0xff]  }
 0x342   :  { %2610 = vmatprep.subr.bf16.mxu1 %v2984_v0 }
 0x343   :  { %1314 = vmatpush1.bf16.msra.mxu0 %v3032_v5  ;;  %v2759_v5 = vld [vmem:[#allocation6 + $0x68] ss:$12 sps:$4 sm:$0xff]  }
 0x344   :  { %1315 = vmatprep.subr.bf16.mxu0 %v3035_v6  ;;  %v3201_v6 = vld [vmem:[#allocation6 + $0x48] ss:$12 sps:$4 sm:$0xff]  }
 0x345   :  { %2611 = vmatpush3.bf16.msra.mxu1 %v2757_v3  ;;  %v1146_v3 = vld [vmem:[#allocation3 + $0x30] sm:$0xff] }
 0x346   :  { %2612 = vmatprep.subr.bf16.mxu1 %v2984_v0 }
 0x347   :  { %1316 = vmatpush1.bf16.msra.mxu0 %v3038_v7  ;;  %v3203_v7 = vld [vmem:[#allocation6 + $0x4c] ss:$12 sps:$4 sm:$0xff]  }
 0x348   :  { %1317 = vmatprep.subr.bf16.mxu0 %v3041_v8  ;;  %v3205_v8 = vld [vmem:[#allocation6 + $0x34] ss:$12 sps:$4 sm:$0xff]  }
 0x349   :  { %2613 = vmatpush3.bf16.msra.mxu1 %v2758_v4  ;;  %v1148_v4 = vunpack.c.l.bf16 %v1146_v3 }
 0x34a   :  { %2614 = vmatprep.subr.bf16.mxu1 %v2984_v0 }
 0x34b   :  { %1318 = vmatpush1.bf16.msra.mxu0 %v3044_v10  ;;  %v2763_v10 = vld [vmem:[#allocation6 + $0x50] ss:$12 sps:$4 sm:$0xff]  }
 0x34c   :  { %1319 = vmatprep.subr.bf16.mxu0 %v3203_v7 }
 0x34d   :  { %2615 = vmatpush3.bf16.msra.mxu1 %v2759_v5 }
 0x34e   :  { %2616 = vmatprep.subr.bf16.mxu1 %v2984_v0 }
 0x34f   :  { %1320 = vmatpush1.bf16.msra.mxu0 %v3201_v6 }
 0x350   :  { %1321 = vmatprep.subr.bf16.mxu0 %v3205_v8 }
 0x351   :  { %2617 = vmatpush3.bf16.msra.mxu1 %v2763_v10 }
 0x352   :  { %2618 = vmatprep.subr.bf16.mxu1 %v2984_v0 }
 0x353   :  { %1322 = vmatpush1.bf16.msra.mxu0 %v3209_v45 }
 0x354   :  { %1323 = vmatprep.subr.bf16.mxu0 %v3213_v46 }
 0x355   :  { %2619 = vmatpush3.bf16.msra.mxu1 %v2767_v47 }
 0x356   :  { %2620 = vmatprep.subr.bf16.mxu1 %v2984_v0 }
 0x357   :  { %1324 = vmatpush1.bf16.msra.mxu0 %v3216_v48 }
 0x358   :  { %1325 = vmatprep.subr.bf16.mxu0 %v3220_v49 }
 0x359   :  { %2621 = vmatpush3.bf16.msra.mxu1 %v2771_v50 }
 0x35a   :  { %2622 = vmatprep.subr.bf16.mxu1 %v2984_v0 }
 0x35b   :  { %1326 = vmatpush1.bf16.msra.mxu0 %v3223_v51 }
 0x35c   :  { %1582 = vmatprep.subr.bf16.mxu0 %v3240_v29 }
 0x35d   :  { %2623 = vmatpush3.bf16.msra.mxu1 %v2775_v54 }
 0x35e   :  { %2628 = vmatprep.subr.bf16.mxu1 %v2984_v0 }
 0x3fe   :  { %v1074_v57 = vpop.f32.mrf.mxu0  ;;  %v1115_v58 = vpop.f32.mrf.mxu1 }
 0x3ff   :  { %v1121_v59 = vadd.f32 %v1074_v57, %v877_v56  ;;  %v1135_v9 = vadd.f32 %v1115_v58, %v3108_v52 }
 0x400   :  { %v1076_v60 = vpop.f32.mrf.mxu0  ;;  %v2606_v53 = vpop.f32.mrf.mxu1 }
 0x401   :  { %v2350_v11 = vmul.f32 -1.442695, %v1121_v59  ;;  %v1128_v19 = vadd.f32 %v1076_v60, %v878_v2  ;;  %v1149_v60 = vunpack.c.h.bf16 %v1146_v3 }
 0x402   :  { %v1078_v13 = vpop.f32.mrf.mxu0  ;;  %v1118_v14 = vpop.f32.mrf.mxu1 }
 0x403   :  { %2842 = vpow2.f32 %v2350_v11  ;;  %v2351_v20 = vmul.f32 -1.442695, %v1128_v19 }
 0x404   :  { %v1079_v16 = vpop.f32.mrf.mxu0  ;;  %v2607_v17 = vpop.f32.mrf.mxu1 }
 0x405   :  { %2844 = vpow2.f32 %v2351_v20  ;;  %v3281_v16 = vld [vmem:[#allocation3 + $0x38] ss:$12 sps:$4 sm:$0xff]  }
 0x406   :  { %v1150_v2 = vunpack.c.l.bf16 %v3281_v16 }
 0x410   :  { %v2843_v22 = vpop.eup %2842 }
 0x411   :  { %v1125_v61 = vadd.f32 1.0, %v2843_v22 }
 0x412   :  { %v2845_v62 = vpop.eup %2844 }
 0x413   :  { %2846 = vrcp.f32 %v1125_v61  ;;  %v1132_v21 = vadd.f32 1.0, %v2845_v62 }
 0x420   :  { %v2847_v12 = vpop.eup %2846 }
 0x421   :  { %v1136_v15 = vmul.f32 %v2847_v12, %v1135_v9 }
 0x423   :  { %v1137_v18 = vadd.f32 %v1136_v15, %v879_v63 }
 0x425   :  { %2848 = vtanh.f32 %v1137_v18 }
 0x426   :  { %2850 = vrcp.f32 %v1132_v21 }
 0x432   :  { %v2849_v23 = vpop.eup %2848 }
 0x433   :  { %v1139_v24 = vsub.f32 %v3184_v42, %v2849_v23  ;;  %v2851_v25 = vpop.eup %2850  ;;  %v2793_v42 = vld [vmem:[#allocation6 + $0x38] ss:$12 sps:$4 sm:$0xff]  }
 0x435   :  { %v1140_v26 = vmul.f32 %v2851_v25, %v1139_v24  ;;  %v2797_v24 = vld [vmem:[#allocation6 + $0x98] ss:$12 sps:$4 sm:$0xff]   ;;  %v2798_v25 = vld [vmem:[#allocation6 + $0x80] ss:$12 sps:$4 sm:$0xff]  }
 0x437   :  { %v3233_v27 = vadd.f32 %v2849_v23, %v1140_v26  ;;  %v2796_v23 = vld [vmem:[#allocation6 + $0xb0] ss:$12 sps:$4 sm:$0xff]   ;;  %v2799_v26 = vld [vmem:[#allocation6 + $0x68] ss:$12 sps:$4 sm:$0xff]  }
 0x439   :  { %v1142_v28 = vpack.c.bf16 %v3233_v27, %v3233_v27 }
 0x43b   :  { %1144 = vst [vmem:[#allocation9 + $0xc] sm:$0xf] %v1142_v28  ;;  %1344 = vmatmul.mubr.bf16.vlgmr.msra.gmra.mxu0 %v1142_v28  ;;  %2625 = vmatmul.mubr.bf16.vlgmr.msra.gmra.mxu1 %v1142_v28  ;;  %v2801_v28 = vld [vmem:[#allocation6 + $0x38] ss:$12 sps:$4 sm:$0xff]  }
 0x43c   :  { %1614 = vmatprep.mubr.bf16.mxu0 %v2985_v1  ;;  %2644 = vmatprep.mubr.msk.bf16.mxu1 %vm2986_vm0, %v2984_v0 }
 0x43d   :  { %1583 = vmatpush1.bf16.msra.mxu0 %v3242_v30  ;;  %2629 = vmatpush3.bf16.msra.mxu1 %v2779_v31  ;;  %v2803_v31 = vld [vmem:[#allocation6 + $0x8] ss:$12 sps:$4 sm:$0xff]  }
 0x43e   :  { %2630 = vmatprep.subr.bf16.mxu1 %v2984_v0  ;;  %1584 = vmatprep.subr.bf16.mxu0 %v3246_v32 }
 0x441   :  { %1585 = vmatpush1.bf16.msra.mxu0 %v3249_v33  ;;  %2631 = vmatpush3.bf16.msra.mxu1 %v2783_v34  ;;  %v1417_v34 = vld [vmem:[#allocation3 + $0x3c] sm:$0xff] }
 0x442   :  { %2632 = vmatprep.subr.bf16.mxu1 %v2984_v0  ;;  %1586 = vmatprep.subr.bf16.mxu0 %v3253_v35 }
 0x445   :  { %1587 = vmatpush1.bf16.msra.mxu0 %v3256_v36  ;;  %2633 = vmatpush3.bf16.msra.mxu1 %v2787_v37  ;;  %v1419_v37 = vunpack.c.l.bf16 %v1417_v34 }
 0x446   :  { %2634 = vmatprep.subr.bf16.mxu1 %v2984_v0  ;;  %1588 = vmatprep.subr.bf16.mxu0 %v3262_v39 }
 0x449   :  { %1589 = vmatpush1.bf16.msra.mxu0 %v3260_v38  ;;  %2635 = vmatpush3.bf16.msra.mxu1 %v2791_v40 }
 0x44a   :  { %1590 = vmatprep.subr.bf16.mxu0 %v3203_v7  ;;  %2636 = vmatprep.subr.bf16.mxu1 %v2984_v0 }
 0x44d   :  { %1591 = vmatpush1.bf16.msra.mxu0 %v3201_v6  ;;  %2637 = vmatpush3.bf16.msra.mxu1 %v2792_v41 }
 0x44e   :  { %1592 = vmatprep.subr.bf16.mxu0 %v3205_v8  ;;  %2638 = vmatprep.subr.bf16.mxu1 %v2984_v0 }
 0x451   :  { %1593 = vmatpush1.bf16.msra.mxu0 %v3209_v45  ;;  %2639 = vmatpush3.bf16.msra.mxu1 %v2793_v42 }
 0x452   :  { %1594 = vmatprep.subr.bf16.mxu0 %v3213_v46  ;;  %2640 = vmatprep.subr.bf16.mxu1 %v2984_v0 }
 0x455   :  { %1595 = vmatpush1.bf16.msra.mxu0 %v3216_v48  ;;  %2641 = vmatpush3.bf16.msra.mxu1 %v2794_v43 }
 0x456   :  { %1596 = vmatprep.subr.bf16.mxu0 %v3220_v49  ;;  %2642 = vmatprep.subr.bf16.mxu1 %v2984_v0 }
 0x459   :  { %1597 = vmatpush1.bf16.msra.mxu0 %v3223_v51  ;;  %2643 = vmatpush3.bf16.msra.mxu1 %v2795_v44 }
 0x45a   :  { %1853 = vmatprep.subr.bf16.mxu0 %v3240_v29  ;;  %2648 = vmatprep.subr.bf16.mxu1 %v2984_v0 }
 0x4fb   :  { %v1345_v5 = vpop.f32.mrf.mxu0  ;;  %v1386_v10 = vpop.f32.mrf.mxu1 }
 0x4fc   :  { %v1392_v47 = vadd.f32 %v1345_v5, %v1148_v4  ;;  %v1406_v19 = vadd.f32 %v1386_v10, %v3108_v52 }
 0x4fd   :  { %v1347_v50 = vpop.f32.mrf.mxu0  ;;  %v2626_v54 = vpop.f32.mrf.mxu1 }
 0x4fe   :  { %v2376_v55 = vmul.f32 -1.442695, %v1392_v47  ;;  %v1399_v53 = vadd.f32 %v1347_v50, %v1149_v60  ;;  %v1420_v50 = vunpack.c.h.bf16 %v1417_v34 }
 0x4ff   :  { %v1349_v56 = vpop.f32.mrf.mxu0  ;;  %v1389_v57 = vpop.f32.mrf.mxu1 }
 0x500   :  { %2852 = vpow2.f32 %v2376_v55  ;;  %v2377_v11 = vmul.f32 -1.442695, %v1399_v53 }
 0x501   :  { %v1350_v58 = vpop.f32.mrf.mxu0  ;;  %v2627_v59 = vpop.f32.mrf.mxu1 }
 0x502   :  { %2854 = vpow2.f32 %v2377_v11  ;;  %v1421_v59 = vunpack.c.h.bf16 %v3281_v16 }
 0x50d   :  { %v2853_v13 = vpop.eup %2852 }
 0x50e   :  { %v1396_v14 = vadd.f32 1.0, %v2853_v13 }
 0x50f   :  { %v2855_v17 = vpop.eup %2854 }
 0x510   :  { %2856 = vrcp.f32 %v1396_v14  ;;  %v1403_v62 = vadd.f32 1.0, %v2855_v17 }
 0x51d   :  { %v2857_v20 = vpop.eup %2856 }
 0x51e   :  { %v1407_v22 = vmul.f32 %v2857_v20, %v1406_v19 }
 0x520   :  { %v1408_v61 = vadd.f32 %v1407_v22, %v1150_v2 }
 0x522   :  { %2858 = vtanh.f32 %v1408_v61 }
 0x523   :  { %2860 = vrcp.f32 %v1403_v62 }
 0x52f   :  { %v2859_v63 = vpop.eup %2858 }
 0x530   :  { %v1410_v9 = vsub.f32 %v3233_v27, %v2859_v63  ;;  %v2861_v12 = vpop.eup %2860  ;;  %v2800_v27 = vld [vmem:[#allocation6 + $0x50] ss:$12 sps:$4 sm:$0xff]  }
 0x532   :  { %v1411_v15 = vmul.f32 %v2861_v12, %v1410_v9 }
 0x534   :  { %v3286_v18 = vadd.f32 %v2859_v63, %v1411_v15 }
 0x536   :  { %v1413_v21 = vpack.c.bf16 %v3286_v18, %v3286_v18 }
 0x538   :  { %1415 = vst [vmem:[#allocation9 + $0x10] sm:$0xf] %v1413_v21  ;;  %1615 = vmatmul.mubr.bf16.vlgmr.msra.gmra.mxu0 %v1413_v21  ;;  %2645 = vmatmul.mubr.bf16.vlgmr.msra.gmra.mxu1 %v1413_v21 }
 0x539   :  { %1854 = vmatpush1.bf16.msra.mxu0 %v3242_v30  ;;  %1885 = vmatprep.mubr.bf16.mxu0 %v2985_v1 }
 0x53a   :  { %1855 = vmatprep.subr.bf16.mxu0 %v3246_v32  ;;  %2664 = vmatprep.mubr.msk.bf16.mxu1 %vm2986_vm0, %v2984_v0 }
 0x53b   :  { %2649 = vmatpush3.bf16.msra.mxu1 %v2796_v23 }
 0x53c   :  { %2650 = vmatprep.subr.bf16.mxu1 %v2984_v0 }
 0x53d   :  { %1856 = vmatpush1.bf16.msra.mxu0 %v3249_v33 }
 0x53e   :  { %1857 = vmatprep.subr.bf16.mxu0 %v3253_v35 }
 0x53f   :  { %2651 = vmatpush3.bf16.msra.mxu1 %v2797_v24 }
 0x540   :  { %2652 = vmatprep.subr.bf16.mxu1 %v2984_v0 }
 0x541   :  { %1858 = vmatpush1.bf16.msra.mxu0 %v3256_v36 }
 0x542   :  { %1859 = vmatprep.subr.bf16.mxu0 %v3262_v39 }
 0x543   :  { %2653 = vmatpush3.bf16.msra.mxu1 %v2798_v25 }
 0x544   :  { %2654 = vmatprep.subr.bf16.mxu1 %v2984_v0 }
 0x545   :  { %1860 = vmatpush1.bf16.msra.mxu0 %v3260_v38 }
 0x546   :  { %1861 = vmatprep.subr.bf16.mxu0 %v3203_v7 }
 0x547   :  { %2655 = vmatpush3.bf16.msra.mxu1 %v2799_v26 }
 0x548   :  { %2656 = vmatprep.subr.bf16.mxu1 %v2984_v0 }
 0x549   :  { %1862 = vmatpush1.bf16.msra.mxu0 %v3201_v6 }
 0x54a   :  { %1863 = vmatprep.subr.bf16.mxu0 %v3205_v8 }
 0x54b   :  { %2657 = vmatpush3.bf16.msra.mxu1 %v2800_v27 }
 0x54c   :  { %2658 = vmatprep.subr.bf16.mxu1 %v2984_v0 }
 0x54d   :  { %1864 = vmatpush1.bf16.msra.mxu0 %v3209_v45 }
 0x54e   :  { %1865 = vmatprep.subr.bf16.mxu0 %v3213_v46 }
 0x54f   :  { %2659 = vmatpush3.bf16.msra.mxu1 %v2801_v28 }
 0x550   :  { %2660 = vmatprep.subr.bf16.mxu1 %v2984_v0 }
 0x551   :  { %1866 = vmatpush1.bf16.msra.mxu0 %v3216_v48 }
 0x552   :  { %1867 = vmatprep.subr.bf16.mxu0 %v3220_v49 }
 0x555   :  { %1868 = vmatpush1.bf16.msra.mxu0 %v3223_v51 }
 0x556   :  { %2124 = vmatprep.subr.bf16.mxu0 %v3240_v29  ;;  %v2802_v29 = vld [vmem:[#allocation6 + $0x20] ss:$12 sps:$4 sm:$0xff]  }
 0x557   :  { %2661 = vmatpush3.bf16.msra.mxu1 %v2802_v29 }
 0x558   :  { %2662 = vmatprep.subr.bf16.mxu1 %v2984_v0 }
 0x55b   :  { %2663 = vmatpush3.bf16.msra.mxu1 %v2803_v31 }
 0x55c   :  { %2668 = vmatprep.subr.bf16.mxu1 %v2984_v0 }
 0x5f8   :  { %v1616_v40 = vpop.f32.mrf.mxu0  ;;  %v1657_v41 = vpop.f32.mrf.mxu1 }
 0x5f9   :  { %v1663_v42 = vadd.f32 %v1616_v40, %v1419_v37  ;;  %v1677_v60 = vadd.f32 %v1657_v41, %v3108_v52 }
 0x5fa   :  { %v1618_v43 = vpop.f32.mrf.mxu0  ;;  %v2646_v44 = vpop.f32.mrf.mxu1 }
 0x5fb   :  { %v2402_v3 = vmul.f32 -1.442695, %v1663_v42  ;;  %v1670_v54 = vadd.f32 %v1618_v43, %v1420_v50  ;;  %v1959_v44 = vld [vmem:[#allocation3 + $0x54] sm:$0xff] }
 0x5fc   :  { %v1620_v4 = vpop.f32.mrf.mxu0  ;;  %v1660_v5 = vpop.f32.mrf.mxu1 }
 0x5fd   :  { %2862 = vpow2.f32 %v2402_v3  ;;  %v2403_v55 = vmul.f32 -1.442695, %v1670_v54  ;;  %v1961_v3 = vunpack.c.l.bf16 %v1959_v44 }
 0x5fe   :  { %v1621_v10 = vpop.f32.mrf.mxu0  ;;  %v2647_v47 = vpop.f32.mrf.mxu1 }
 0x5ff   :  { %2864 = vpow2.f32 %v2403_v55 }
 0x60a   :  { %v2863_v56 = vpop.eup %2862 }
 0x60b   :  { %v1667_v57 = vadd.f32 1.0, %v2863_v56 }
 0x60c   :  { %v2865_v58 = vpop.eup %2864 }
 0x60d   :  { %2866 = vrcp.f32 %v1667_v57  ;;  %v1674_v14 = vadd.f32 1.0, %v2865_v58  ;;  %v1962_v58 = vunpack.c.h.bf16 %v1959_v44 }
 0x61a   :  { %v2867_v53 = vpop.eup %2866 }
 0x61b   :  { %v1678_v11 = vmul.f32 %v2867_v53, %v1677_v60 }
 0x61d   :  { %v1679_v13 = vadd.f32 %v1678_v11, %v1421_v59 }
 0x61f   :  { %2868 = vtanh.f32 %v1679_v13 }
 0x620   :  { %2870 = vrcp.f32 %v1674_v14 }
 0x62c   :  { %v2869_v17 = vpop.eup %2868 }
 0x62d   :  { %v1681_v2 = vsub.f32 %v3286_v18, %v2869_v17  ;;  %v2871_v19 = vpop.eup %2870 }
 0x62f   :  { %v1682_v20 = vmul.f32 %v2871_v19, %v1681_v2 }
 0x631   :  { %v3320_v22 = vadd.f32 %v2869_v17, %v1682_v20  ;;  %v2892_v17 = vld [vmem:[#allocation8] sm:$0xff] }
 0x633   :  { %v1684_v61 = vpack.c.bf16 %v3320_v22, %v3320_v22 }
 0x635   :  { %1686 = vst [vmem:[#allocation9 + $0x14] sm:$0xf] %v1684_v61  ;;  %1886 = vmatmul.mubr.bf16.vlgmr.msra.gmra.mxu0 %v1684_v61  ;;  %2665 = vmatmul.mubr.bf16.vlgmr.msra.gmra.mxu1 %v1684_v61 }
 0x636   :  { %2125 = vmatpush1.bf16.msra.mxu0 %v3242_v30  ;;  %2156 = vmatprep.mubr.bf16.mxu0 %v2985_v1  ;;  %v2804_v1 = vld [vmem:[#allocation6 + $0xb0] ss:$12 sps:$4 sm:$0xff]   ;;  %v2805_v30 = vld [vmem:[#allocation6 + $0x98] ss:$12 sps:$4 sm:$0xff]  }
 0x637   :  { %2126 = vmatprep.subr.bf16.mxu0 %v3246_v32  ;;  %2684 = vmatprep.mubr.msk.bf16.mxu1 %vm2986_vm0, %v2984_v0 }
 0x638   :  { %2669 = vmatpush3.bf16.msra.mxu1 %v2804_v1 }
 0x639   :  { %2670 = vmatprep.subr.bf16.mxu1 %v2984_v0 }
 0x63a   :  { %2127 = vmatpush1.bf16.msra.mxu0 %v3249_v33 }
 0x63b   :  { %2128 = vmatprep.subr.bf16.mxu0 %v3253_v35 }
 0x63c   :  { %2671 = vmatpush3.bf16.msra.mxu1 %v2805_v30 }
 0x63d   :  { %2672 = vmatprep.subr.bf16.mxu1 %v2984_v0 }
 0x63e   :  { %2129 = vmatpush1.bf16.msra.mxu0 %v3256_v36 }
 0x63f   :  { %2130 = vmatprep.subr.bf16.mxu0 %v3262_v39 }
 0x642   :  { %2131 = vmatpush1.bf16.msra.mxu0 %v3260_v38 }
 0x643   :  { %2132 = vmatprep.subr.bf16.mxu0 %v3203_v7  ;;  %v2807_v7 = vld [vmem:[#allocation6 + $0x68] ss:$12 sps:$4 sm:$0xff]  }
 0x646   :  { %2133 = vmatpush1.bf16.msra.mxu0 %v3201_v6  ;;  %v2806_v6 = vld [vmem:[#allocation6 + $0x80] ss:$12 sps:$4 sm:$0xff]  }
 0x647   :  { %2134 = vmatprep.subr.bf16.mxu0 %v3205_v8  ;;  %2673 = vmatpush3.bf16.msra.mxu1 %v2806_v6  ;;  %v2808_v8 = vld [vmem:[#allocation6 + $0x50] ss:$12 sps:$4 sm:$0xff]  }
 0x648   :  { %2674 = vmatprep.subr.bf16.mxu1 %v2984_v0 }
 0x64a   :  { %2135 = vmatpush1.bf16.msra.mxu0 %v3209_v45  ;;  %v2809_v45 = vld [vmem:[#allocation6 + $0x38] ss:$12 sps:$4 sm:$0xff]  }
 0x64b   :  { %2136 = vmatprep.subr.bf16.mxu0 %v3213_v46  ;;  %2675 = vmatpush3.bf16.msra.mxu1 %v2807_v7  ;;  %v2810_v46 = vld [vmem:[#allocation6 + $0x20] ss:$12 sps:$4 sm:$0xff]  }
 0x64c   :  { %2676 = vmatprep.subr.bf16.mxu1 %v2984_v0 }
 0x64e   :  { %2137 = vmatpush1.bf16.msra.mxu0 %v3216_v48  ;;  %v2811_v48 = vld [vmem:[#allocation6 + $0x8] ss:$12 sps:$4 sm:$0xff]  }
 0x64f   :  { %2138 = vmatprep.subr.bf16.mxu0 %v3220_v49  ;;  %2677 = vmatpush3.bf16.msra.mxu1 %v2808_v8  ;;  %v1688_v49 = vld [vmem:[#allocation3 + $0x48] sm:$0xff] }
 0x650   :  { %2678 = vmatprep.subr.bf16.mxu1 %v2984_v0  ;;  %v1691_v12 = vunpack.c.h.bf16 %v1688_v49 }
 0x652   :  { %2139 = vmatpush1.bf16.msra.mxu0 %v3223_v51  ;;  %v1690_v51 = vunpack.c.l.bf16 %v1688_v49 }
 0x653   :  { %2679 = vmatpush3.bf16.msra.mxu1 %v2809_v45 }
 0x654   :  { %2680 = vmatprep.subr.bf16.mxu1 %v2984_v0 }
 0x657   :  { %2681 = vmatpush3.bf16.msra.mxu1 %v2810_v46 }
 0x658   :  { %2682 = vmatprep.subr.bf16.mxu1 %v2984_v0  ;;  %v1689_v0 = vld [vmem:[#allocation3 + $0x50] ss:$12 sps:$4 sm:$0xff]  }
 0x659   :  { %v1692_v25 = vunpack.c.l.bf16 %v1689_v0  ;;  %v1963_v14 = vunpack.c.h.bf16 %v1689_v0 }
 0x65b   :  { %2683 = vmatpush3.bf16.msra.mxu1 %v2811_v48 }
 0x6f5   :  { %v1887_v32 = vpop.f32.mrf.mxu0  ;;  %v1928_v33 = vpop.f32.mrf.mxu1 }
 0x6f6   :  { %v1934_v35 = vadd.f32 %v1887_v32, %v1690_v51  ;;  %v1948_v26 = vadd.f32 %v1928_v33, %v3108_v52 }
 0x6f7   :  { %v1889_v36 = vpop.f32.mrf.mxu0  ;;  %v2666_v38 = vpop.f32.mrf.mxu1 }
 0x6f8   :  { %v2428_v39 = vmul.f32 -1.442695, %v1934_v35  ;;  %v1941_v15 = vadd.f32 %v1889_v36, %v1691_v12 }
 0x6f9   :  { %v1891_v16 = vpop.f32.mrf.mxu0  ;;  %v1931_v62 = vpop.f32.mrf.mxu1 }
 0x6fa   :  { %2872 = vpow2.f32 %v2428_v39  ;;  %v2429_v18 = vmul.f32 -1.442695, %v1941_v15 }
 0x6fb   :  { %v1892_v63 = vpop.f32.mrf.mxu0  ;;  %v2667_v9 = vpop.f32.mrf.mxu1 }
 0x6fc   :  { %2874 = vpow2.f32 %v2429_v18 }
 0x707   :  { %v2873_v21 = vpop.eup %2872 }
 0x708   :  { %v1938_v23 = vadd.f32 1.0, %v2873_v21 }
 0x709   :  { %v2875_v24 = vpop.eup %2874 }
 0x70a   :  { %2876 = vrcp.f32 %v1938_v23  ;;  %v1945_v31 = vadd.f32 1.0, %v2875_v24 }
 0x717   :  { %v2877_v27 = vpop.eup %2876 }
 0x718   :  { %v1949_v28 = vmul.f32 %v2877_v27, %v1948_v26 }
 0x71a   :  { %v1950_v29 = vadd.f32 %v1949_v28, %v1692_v25 }
 0x71c   :  { %2878 = vtanh.f32 %v1950_v29 }
 0x71d   :  { %2880 = vrcp.f32 %v1945_v31 }
 0x729   :  { %v2879_v34 = vpop.eup %2878 }
 0x72a   :  { %v1952_v37 = vsub.f32 %v3320_v22, %v2879_v34  ;;  %v2881_v40 = vpop.eup %2880 }
 0x72c   :  { %v1953_v41 = vmul.f32 %v2881_v40, %v1952_v37 }
 0x72e   :  { %v1954_v42 = vadd.f32 %v2879_v34, %v1953_v41 }
 0x730   :  { %v1955_v43 = vpack.c.bf16 %v1954_v42, %v1954_v42 }
 0x732   :  { %1957 = vst [vmem:[#allocation9 + $0x18] sm:$0xf] %v1955_v43  ;;  %2157 = vmatmul.mubr.bf16.vlgmr.msra.gmra.mxu0 %v1955_v43  ;;  %2685 = vmatmul.mubr.bf16.vlgmr.msra.gmra.mxu1 %v1955_v43 }
 0x7f2   :  { %v2158_v4 = vpop.f32.mrf.mxu0  ;;  %v2199_v52 = vpop.f32.mrf.mxu1 }
 0x7f3   :  { %v2205_v5 = vadd.f32 %v2158_v4, %v1961_v3  ;;  %v2219_v2 = vadd.f32 %v2892_v17, %v2199_v52 }
 0x7f4   :  { %v2160_v10 = vpop.f32.mrf.mxu0  ;;  %v2686_v47 = vpop.f32.mrf.mxu1 }
 0x7f5   :  { %v2454_v50 = vmul.f32 -1.442695, %v2205_v5  ;;  %v2212_v59 = vadd.f32 %v2160_v10, %v1962_v58 }
 0x7f6   :  { %v2162_v54 = vpop.f32.mrf.mxu0  ;;  %v2202_v55 = vpop.f32.mrf.mxu1 }
 0x7f7   :  { %2882 = vpow2.f32 %v2454_v50  ;;  %v2455_v60 = vmul.f32 -1.442695, %v2212_v59 }
 0x7f8   :  { %v2163_v56 = vpop.f32.mrf.mxu0  ;;  %v2687_v57 = vpop.f32.mrf.mxu1 }
 0x7f9   :  { %2884 = vpow2.f32 %v2455_v60 }
 0x804   :  { %v2883_v53 = vpop.eup %2882 }
 0x805   :  { %v2209_v11 = vadd.f32 1.0, %v2883_v53 }
 0x806   :  { %v2885_v13 = vpop.eup %2884 }
 0x807   :  { %2886 = vrcp.f32 %v2209_v11  ;;  %v2216_v61 = vadd.f32 1.0, %v2885_v13 }
 0x814   :  { %v2887_v19 = vpop.eup %2886 }
 0x815   :  { %v2220_v20 = vmul.f32 %v2887_v19, %v2219_v2 }
 0x817   :  { %v2221_v22 = vadd.f32 %v2220_v20, %v1963_v14 }
 0x819   :  { %2888 = vtanh.f32 %v2221_v22 }
 0x81a   :  { %2890 = vrcp.f32 %v2216_v61 }
 0x826   :  { %v2889_v1 = vpop.eup %2888 }
 0x827   :  { %v2223_v30 = vsub.f32 %v1954_v42, %v2889_v1  ;;  %v2891_v6 = vpop.eup %2890 }
 0x829   :  { %v2224_v7 = vmul.f32 %v2891_v6, %v2223_v30 }
 0x82b   :  { %v2225_v8 = vadd.f32 %v2889_v1, %v2224_v7 }
 0x82d   :  { %v2226_v45 = vpack.c.bf16 %v2225_v8, %v2225_v8 }
 0x82f   :  { %2228 = vst [vmem:[#allocation9 + $0x1c] sm:$0xf] %v2226_v45 }
 0x830   :  { %2964 = shalt.err (!%p2961_p5)
}
 0x831   :  { %s2989_s29 = smov 64   ;;  %s2990_s30 = smov 4  }
 0x832   :  { %2241 = dma.vmem_to_hbm [thread:$0]  %s2236_s2, 512, %s3357_s3, [#allocation5], %s2989_s29, %s2989_s29, %s2990_s30  }
 0x833   :  { %2977 = dma.done.wait [#allocation5], 512  }
 0x834   :  { %2978 = vsyncadd [#allocation5], 4294966784 }
 0x835   :  { %2245 = vsyncpa [#allocation4], 1 }
 0x836   :  { %2246 = vsyncpa [#allocation7], 1 }
 0x837   :  { %2247 = vsyncpa [#allocation5], 1 }

</bundles_post_ra>
